<compile_context>
chip_gen: v6e
topology: v6e:2x2x1
jax: 0.10.0
libtpu: 0.0.40
codegen_flags: <defaults>
</compile_context>

<pallas_src>
import jax
import jax.numpy as jnp
from jax import lax
from jax.experimental import pallas as pl
from jax.experimental.pallas import tpu as pltpu

NUM_CLASSES = 20
C = NUM_CLASSES + 1          # 21 logits / 21 anchors
LOSS_WEIGHT = 1.0
ANCHOR_WEIGHT = 0.1
BLUR = 0.1                   # geomloss blur, p=1  -> final eps = 0.1
MAX_STEPS = 26               # static bound on eps-annealing schedule length
                             # (covers diam up to ~0.1 * 2^24; clipped below —
                             # silently deviates only for |logits| >~ 1e6)
_LN2 = 0.6931471805599453


def make_anchors():
    # set_anchors(num_classes, val=5): diag(+5), off-diag -5
    return jnp.where(jnp.eye(C, dtype=bool), 5.0, -5.0).astype(jnp.float32)


def _epsilon_schedule(diam):
    """geomloss epsilon_schedule(p=1, diameter, blur, scaling=0.5):
    [diam, diam, diam/2, diam/4, ..., blur].  Returns (eps_table, n_steps)."""
    t = jnp.arange(MAX_STEPS, dtype=jnp.float32)
    eps = jnp.where(t == 0.0, diam,
                    jnp.maximum(diam * jnp.exp(-(t - 1.0) * _LN2), BLUR))
    eps = eps.astype(jnp.float32)
    n_interior = jnp.ceil((jnp.log(diam) - jnp.log(BLUR)) / _LN2)
    n_eps = jnp.minimum(jnp.maximum(n_interior, 0.0) + 2.0,
                        float(MAX_STEPS)).astype(jnp.int32)
    return eps, n_eps


def _anchor_self_potential_mean(anchors, eps_sched, n_eps):
    """Mean beta<->beta (anchor self) Sinkhorn potential after the same
    eps-annealing + last extrapolation.  Batch independent (21x21) -> glue."""
    m = anchors.shape[0]
    neg_logm = -jnp.log(jnp.float32(m))
    aa = jnp.sum(anchors * anchors, axis=1)
    sq = aa[:, None] + aa[None, :] - 2.0 * anchors @ anchors.T
    dyy = jnp.sqrt(jnp.maximum(sq, 0.0))                    # (m, m)

    def softmin(eps, h_log):
        z = h_log - dyy / eps
        zm = jnp.max(z, axis=-1, keepdims=True)
        return (-eps * (zm + jnp.log(jnp.sum(jnp.exp(z - zm), axis=-1,
                                             keepdims=True))))[:, 0]

    gs = softmin(eps_sched[0], neg_logm)                    # (m,)

    def body(t, gs):
        eps = eps_sched[t]
        gst = softmin(eps, neg_logm + gs[None, :] / eps)
        return 0.5 * (gs + gst)

    gs = lax.fori_loop(0, n_eps, body, gs)
    gs_ex = softmin(BLUR, neg_logm + gs[None, :] / BLUR)
    return jnp.mean(gs_ex)


def _pick_tile(n):
    """Rows per grid step: <=256, multiple of 128, and such that the grid has
    at least 2 steps whenever the batch allows it (v7x has 2 TensorCores)."""
    half = ((n + 1) // 2 + 127) // 128 * 128   # round_up_128(ceil(n/2))
    return max(128, min(256, half))


def _make_kernel(n_rows, tn):
    """Kernel closure over the static real row count (padded-row masking)."""
    def kernel(x_ref, div_ref, stats_ref):
        # x_ref:     (tn, C)   logits tile, natural layout (rows on sublanes)
        # div_ref:   (tn, 1)   per-row mean anchor distance (collapsed OT)
        # stats_ref: (1, 2, C) per-tile masked column [min; max] (diameter)
        x = x_ref[...]
        sx = jnp.sum(x, axis=1, keepdims=True)               # (tn, 1)
        xx = jnp.sum(x * x, axis=1, keepdims=True)            # (tn, 1)
        # anchors a_j = 10*e_j - 5*1:  <x_i,a_j> = 10*x_ij - 5*sx_i,
        # ||a_j||^2 = 21*25 = 525
        csq = xx + 10.0 * sx + 525.0 - 20.0 * x                # ||x_i - a_j||^2
        c = jnp.sqrt(jnp.maximum(csq, 0.0))                    # (tn, C)
        # Debiased Sinkhorn (Dirac vs anchors) collapses exactly to the mean
        # anchor distance; the batch-independent <b, g_bb> term is subtracted
        # in the wrapper.
        div_ref[...] = jnp.mean(c, axis=1, keepdims=True)      # (tn, 1)

        # Per-tile column min/max over real (non-padded) rows — finishes the
        # geomloss scaling_parameters diameter in glue, no extra logits pass.
        base = pl.program_id(0) * tn
        rows = base + lax.broadcasted_iota(jnp.int32, (tn, 1), 0)
        valid = rows < n_rows
        col_min = jnp.min(jnp.where(valid, x, jnp.inf), axis=0, keepdims=True)
        col_max = jnp.max(jnp.where(valid, x, -jnp.inf), axis=0, keepdims=True)
        stats_ref[...] = jnp.concatenate([col_min, col_max], axis=0)[None]
    return kernel


def anchor_w_cross_entropy_loss(cls_score, label, weight=None):
    logits = cls_score.reshape(-1, C).astype(jnp.float32)
    n = logits.shape[0]
    anchors = make_anchors()

    if label.ndim > 1:
        label = jnp.argmax(label.reshape(-1, NUM_CLASSES), axis=1)
    label = label.reshape(-1).astype(jnp.int32)

    if weight is None:
        w = jnp.ones((n,), jnp.float32)
    else:
        w = weight.reshape(-1).astype(jnp.float32)

    # --- tile / pad (natural (N, C) layout, no transpose) --------------------
    tn = _pick_tile(n)
    n_pad = (-n) % tn
    if n_pad:
        logits_p = jnp.concatenate(
            [logits, jnp.zeros((n_pad, C), jnp.float32)], axis=0)
    else:
        logits_p = logits
    n_tot = logits_p.shape[0]
    n_tiles = n_tot // tn

    div, stats = pl.pallas_call(
        _make_kernel(n, tn),
        grid=(n_tiles,),
        in_specs=[pl.BlockSpec((tn, C), lambda i: (i, 0))],
        out_specs=(pl.BlockSpec((tn, 1), lambda i: (i, 0)),
                   pl.BlockSpec((1, 2, C), lambda i: (i, 0, 0))),
        out_shape=(jax.ShapeDtypeStruct((n_tot, 1), jnp.float32),
                   jax.ShapeDtypeStruct((n_tiles, 2, C), jnp.float32)),
        compiler_params=pltpu.CompilerParams(
            dimension_semantics=("parallel",)),
    )(logits_p)

    # geomloss scaling_parameters: global bounding-box diameter of x ∪ anchors
    mins = jnp.minimum(jnp.min(stats[:, 0, :], axis=0), jnp.min(anchors, axis=0))
    maxs = jnp.maximum(jnp.max(stats[:, 1, :], axis=0), jnp.max(anchors, axis=0))
    diam = jnp.sqrt(jnp.sum((maxs - mins) ** 2))

    # batch-independent beta<->beta self potential (constant-size 21x21 glue)
    eps_sched, n_eps = _epsilon_schedule(diam)
    gs_mean = _anchor_self_potential_mean(anchors, eps_sched, n_eps)

    # per-row debiased divergence
    s = div[:n, 0] - gs_mean

    # masked, weighted mean over foreground rows (bg labels in [20, num_cls]);
    # denominator is the count of kept rows (matches the reference avg_factor),
    # not the weight sum.
    keep = jnp.logical_or(label < 20, label > NUM_CLASSES)
    keep_f = keep.astype(jnp.float32)
    cnt = jnp.sum(keep_f)
    total = jnp.sum(s * w * keep_f)
    mean = jnp.where(cnt > 0.0, total / cnt, 0.0)
    return LOSS_WEIGHT * ANCHOR_WEIGHT * mean


if __name__ == "__main__":
    key = jax.random.PRNGKey(0)
    k1, k2 = jax.random.split(key)
    n = 300
    cls_score = jax.random.normal(k1, (n, C), jnp.float32) * 2.0
    # labels in [0, 20]; 20 is the background class that gets masked out
    label = jax.random.randint(k2, (n,), 0, NUM_CLASSES + 1, jnp.int32)

    loss = anchor_w_cross_entropy_loss(cls_score, label)
    jax.block_until_ready(loss)
    print("KERNEL_OK")
</pallas_src>

<mosaic_0001>
module attributes {stable_mosaic.version = 11 : i64} {
  func.func @kernel(%arg0: i32, %arg1: memref<256x21xf32, #tpu.memory_space<vmem>>, %arg2: memref<256x1xf32, #tpu.memory_space<vmem>>, %arg3: memref<1x2x21xf32, #tpu.memory_space<vmem>>) attributes {dimension_semantics = [#tpu.dimension_semantics<parallel>], iteration_bounds = array<i64: 2>, scalar_prefetch = 0 : i64, scratch_operands = 0 : i64, tpu.core_type = #tpu.core_type<tc>, window_params = [{transform_indices = @transform_0, window_bounds = array<i64: 256, 21>}, {transform_indices = @transform_1, window_bounds = array<i64: 256, 1>}, {transform_indices = @transform_2, window_bounds = array<i64: 1, 2, 21>}]} {
    %c0 = arith.constant 0 : index
    %c0_0 = arith.constant 0 : index
    %0 = vector.load %arg1[%c0, %c0_0] : memref<256x21xf32, #tpu.memory_space<vmem>>, vector<256x21xf32>
    %cst = arith.constant dense<0.000000e+00> : vector<256xf32>
    %1 = vector.multi_reduction <add>, %0, %cst [1] : vector<256x21xf32> to vector<256xf32>
    %2 = vector.shape_cast %1 : vector<256xf32> to vector<256x1xf32>
    %3 = arith.mulf %0, %0 : vector<256x21xf32>
    %cst_1 = arith.constant dense<0.000000e+00> : vector<256xf32>
    %4 = vector.multi_reduction <add>, %3, %cst_1 [1] : vector<256x21xf32> to vector<256xf32>
    %5 = vector.shape_cast %4 : vector<256xf32> to vector<256x1xf32>
    %cst_2 = arith.constant 1.000000e+01 : f32
    %6 = vector.broadcast %cst_2 : f32 to vector<256x1xf32>
    %7 = arith.mulf %6, %2 : vector<256x1xf32>
    %8 = arith.addf %5, %7 : vector<256x1xf32>
    %cst_3 = arith.constant 5.250000e+02 : f32
    %9 = vector.broadcast %cst_3 : f32 to vector<256x1xf32>
    %10 = arith.addf %8, %9 : vector<256x1xf32>
    %cst_4 = arith.constant 2.000000e+01 : f32
    %11 = vector.broadcast %cst_4 : f32 to vector<256x21xf32>
    %12 = arith.mulf %11, %0 : vector<256x21xf32>
    %13 = vector.broadcast %10 : vector<256x1xf32> to vector<256x21xf32>
    %14 = arith.subf %13, %12 : vector<256x21xf32>
    %cst_5 = arith.constant 0.000000e+00 : f32
    %15 = vector.broadcast %cst_5 : f32 to vector<256x21xf32>
    %16 = arith.maximumf %14, %15 : vector<256x21xf32>
    %17 = math.sqrt %16 : vector<256x21xf32>
    %cst_6 = arith.constant dense<0.000000e+00> : vector<256xf32>
    %18 = vector.multi_reduction <add>, %17, %cst_6 [1] : vector<256x21xf32> to vector<256xf32>
    %19 = vector.shape_cast %18 : vector<256xf32> to vector<256x1xf32>
    %cst_7 = arith.constant 2.100000e+01 : f32
    %20 = vector.broadcast %cst_7 : f32 to vector<256x1xf32>
    %21 = arith.divf %19, %20 : vector<256x1xf32>
    %c0_8 = arith.constant 0 : index
    %c0_9 = arith.constant 0 : index
    %22 = vector.load %arg2[%c0_8, %c0_9] : memref<256x1xf32, #tpu.memory_space<vmem>>, vector<256x1xf32>
    tpu.vector_store %arg2[%c0_8, %c0_9], %21 {strides = array<i32>} : memref<256x1xf32, #tpu.memory_space<vmem>>, vector<256x1xf32>,
    %c256_i32 = arith.constant 256 : i32
    %23 = arith.muli %arg0, %c256_i32 : i32
    %24 = tpu.iota {dimensions = array<i32: 0>} : vector<256x1xi32>
    %25 = vector.broadcast %23 : i32 to vector<256x1xi32>
    %26 = arith.addi %25, %24 : vector<256x1xi32>
    %c300_i32 = arith.constant 300 : i32
    %27 = vector.broadcast %c300_i32 : i32 to vector<256x1xi32>
    %28 = arith.cmpi slt, %26, %27 : vector<256x1xi32>
    %cst_10 = arith.constant 0x7F800000 : f32
    %29 = vector.shape_cast %28 : vector<256x1xi1> to vector<256x1xi1>
    %30 = vector.broadcast %29 : vector<256x1xi1> to vector<256x21xi1>
    %31 = vector.broadcast %cst_10 : f32 to vector<256x21xf32>
    %32 = arith.select %30, %0, %31 : vector<256x21xi1>, vector<256x21xf32>
    %cst_11 = arith.constant dense<0x7F800000> : vector<21xf32>
    %33 = vector.multi_reduction <minimumf>, %32, %cst_11 [0] : vector<256x21xf32> to vector<21xf32>
    %34 = vector.shape_cast %33 : vector<21xf32> to vector<1x21xf32>
    %cst_12 = arith.constant 0xFF800000 : f32
    %35 = vector.shape_cast %28 : vector<256x1xi1> to vector<256x1xi1>
    %36 = vector.broadcast %35 : vector<256x1xi1> to vector<256x21xi1>
    %37 = vector.broadcast %cst_12 : f32 to vector<256x21xf32>
    %38 = arith.select %36, %0, %37 : vector<256x21xi1>, vector<256x21xf32>
    %cst_13 = arith.constant dense<0xFF800000> : vector<21xf32>
    %39 = vector.multi_reduction <maximumf>, %38, %cst_13 [0] : vector<256x21xf32> to vector<21xf32>
    %40 = vector.shape_cast %39 : vector<21xf32> to vector<1x21xf32>
    %41 = tpu.concatenate %34, %40 in 0 : vector<1x21xf32>, vector<1x21xf32> -> vector<2x21xf32>
    %42 = vector.shape_cast %41 : vector<2x21xf32> to vector<1x2x21xf32>
    %c0_14 = arith.constant 0 : index
    %c0_15 = arith.constant 0 : index
    %c0_16 = arith.constant 0 : index
    %43 = vector.load %arg3[%c0_14, %c0_15, %c0_16] : memref<1x2x21xf32, #tpu.memory_space<vmem>>, vector<1x2x21xf32>
    tpu.vector_store %arg3[%c0_14, %c0_15, %c0_16], %42 {strides = array<i32>} : memref<1x2x21xf32, #tpu.memory_space<vmem>>, vector<1x2x21xf32>,
    return
  }
  func.func @transform_0(%arg0: i32) -> (i32, i32) {
    %c0_i32 = arith.constant 0 : i32
    %c0_i32_0 = arith.constant 0 : i32
    return %arg0, %c0_i32 : i32, i32
  }
  func.func @transform_1(%arg0: i32) -> (i32, i32) {
    %c0_i32 = arith.constant 0 : i32
    %c0_i32_0 = arith.constant 0 : i32
    return %arg0, %c0_i32 : i32, i32
  }
  func.func @transform_2(%arg0: i32) -> (i32, i32, i32) {
    %c0_i32 = arith.constant 0 : i32
    %c0_i32_0 = arith.constant 0 : i32
    %c0_i32_1 = arith.constant 0 : i32
    return %arg0, %c0_i32, %c0_i32_0 : i32, i32, i32
  }
}

</mosaic_0001>

<bundles_post_ra>
// kernel: tpu_custom_call.1
= control target key start
LH: loop header
LB: loop body
LE: loop exit
PB: predicated region body
PF: predicated region fallthrough
CT: control target
= control target key end

     0   :  { %8 = vsyncpa [#allocation3], 0  ;;  %s3138_s0 = inlined_call_operand.vmem [shape: f32[512,21], index: 0, kind: input, shape index: {}]   ;;  %s3139_s1 = inlined_call_operand.vmem [shape: f32[512,1], index: 1, kind: output, shape index: {0}]   ;;  %s3140_s2 = inlined_call_operand.hbm [shape: f32[2,2,21], index: 2, kind: output, shape index: {1}]  }
   0x1   :  { %10 = vsyncpa [#allocation3 + $0x1], 0  ;;  %s1668_s9 = smov 0   ;;  %s1670_s10 = smov 0  }
   0x2   :  { %s1672_s11 = smov 0   ;;  %s1674_s12 = smov 0  }
   0x3 LB: > { %s1689_s13 = sadd.s32 4294967295, %s1650_s12   ;;  %s1469_s14 = sadd.s32 4294967294, %s1650_s12   ;;  %s1650_s12 = sphi %s1674_s12, %s3279_s12   ;;  %s1646_s11 = sphi %s1672_s11, %s3278_s11   ;;  %s1642_s10 = sphi %s1670_s10, %s3277_s10   ;;  %s1638_s9 = sphi %s1668_s9, %s3276_s9  }
   0x4   : > { %s1693_s15 = sadd.s32 1, %s1650_s12   ;;  %s75_s16 = sadd.s32 1, %s1646_s11 }
   0x5   : > { %s72_s17 = ssub.s32 %s1650_s12, %s1693_s15  ;;  %p85_p0 = scmp.ne.s32.totalorder %s1646_s11, %s1642_s10 }
   0x6   : > { %p73_p1 = scmp.eq.s32.totalorder %s72_s17, 0  ;;  %p86_p2 = scmp.eq.s32.totalorder %s1689_s13, 1 }
   0x7   : > { %p91_p3 = scmp.ne.s32.totalorder %s1642_s10, %s1638_s9  ;;  %p92_p4 = scmp.eq.s32.totalorder %s1469_s14, 1 }
   0x8   : > { %s1704_s18 = scalar_select %p73_p1, %s1646_s11, %s75_s16  }
   0x9   : > { %p1706_p5 = por %p86_p2, %p85_p0  ;;  %p1710_p6 = por %p92_p4, %p91_p3 }
   0xa   : > { %p1472_p7 = scmp.ge.s32.totalorder %s1650_s12, 1  ;;  %p119_p8 = scmp.lt.s32.totalorder %s1650_s12, 3 }
   0xc   : > { %p120_p9 = pnand %p1472_p7, %p119_p8 }
   0xe   : > { %123 = sbr.rel (%p120_p9) target bundleno = 481 (0x1e1), region = 24 }
  0x13   : > { %s1717_s21 = sshll.u32 %s1689_s13, 5  ;;  %vm190_vm0 = vcmask 171008   ;;  %s1478_s27 = sshll.u32 %s1689_s13, 8 }
  0x14   : > { %p147_p10 = scmp.lt.s32.totalorder %s1717_s21, 63  ;;  %s143_s28 = sand.u32 1, %s1642_s10  }
  0x15   : > { %s1473_s29 = sshll.u32 %s143_s28, 1  ;;  %s3032_s6 = scalar_lea.hbm %s3140_s2, %s1717_s21 }
  0x16   : > { %s1721_s22 = scalar_select %p147_p10, %s1717_s21, 63 }
  0x17   : > { %s145_s30 = scalar_lea.vmem [#allocation2], %s1473_s29  ;;  %s1368_s7 = scalar_lea.sflag [#allocation3], %s143_s28 }
  0x18   : > { %s1475_s23 = sshll.u32 %s1721_s22, 3  ;;  %s1385_s3 = sshll.u32 %s145_s30, 4  ;;  %s1386_s3 = int_to_ptr.vmem [resolvable:$true] %s1385_s3 }
  0x19   : > { %s1729_s26 = scalar_lea.vmem %s3138_s0, %s1475_s23  ;;  %s1590_s8 = scalar_lea.vmem %s1386_s3, 32 }
  0x1a   : > { %v1732_v0 = vld [vmem:[%s1729_s26 + $0x10] sm:$0xff]  ;;  %v1735_v1 = vld [vmem:[%s1729_s26] sm:$0xff]  ;;  %v1738_v2 = vld [vmem:[%s1729_s26 + $0x18] sm:$0xff]  ;;  %p1591_p11 = scmp.ne.s32.totalorder %s1386_s3, %s1590_s8  ;;  %s1652_s13 = smov [#allocation2]  }
  0x1b   : > { %v197_v3 = vsel %vm190_vm0, %v1732_v0, 0.0  ;;  %v191_v4 = vsel %vm190_vm0, %v1735_v1, 0.0  ;;  %v1745_v5 = vld [vmem:[%s1729_s26 + $0x8] sm:$0xff]  ;;  %v200_v6 = vsel %vm190_vm0, %v1738_v2, 0.0  ;;  %v1755_v9 = vld [vmem:[%s1729_s26 + $0x20] sm:$0xff]  ;;  %v1762_v12 = vld [vmem:[%s1729_s26 + $0x38] sm:$0xff] }
  0x1c   : > { %198 = vadd.xlane.f32.xlu1 %v197_v3  ;;  %192 = vadd.xlane.f32.xlu0 %v191_v4  ;;  %v194_v7 = vsel %vm190_vm0, %v1745_v5, 0.0  ;;  %v1752_v8 = vld [vmem:[%s1729_s26 + $0x28] sm:$0xff]  ;;  %v203_v11 = vsel %vm190_vm0, %v1755_v9, 0.0  ;;  %v1765_v13 = vld [vmem:[%s1729_s26 + $0x30] sm:$0xff]  ;;  %v212_v14 = vsel %vm190_vm0, %v1762_v12, 0.0  ;;  %v1775_v17 = vld [vmem:[%s1729_s26 + $0x40] sm:$0xff]  ;;  %v288_v3 = vmul.f32 %v1745_v5, %v1745_v5  ;;  %p1592_p12 = pnand %p1591_p11, %p1706_p5 }
  0x1d   : > { %v206_v10 = vsel %vm190_vm0, %v1752_v8, 0.0  ;;  %v209_v15 = vsel %vm190_vm0, %v1765_v13, 0.0  ;;  %v1772_v16 = vld [vmem:[%s1729_s26 + $0x48] sm:$0xff]  ;;  %v215_v19 = vsel %vm190_vm0, %v1775_v17, 0.0  ;;  %v1782_v20 = vld [vmem:[%s1729_s26 + $0x58] sm:$0xff]  ;;  %v1785_v21 = vld [vmem:[%s1729_s26 + $0x50] sm:$0xff] }
  0x1e   : > { %v218_v18 = vsel %vm190_vm0, %v1772_v16, 0.0  ;;  %v224_v22 = vsel %vm190_vm0, %v1782_v20, 0.0  ;;  %v221_v23 = vsel %vm190_vm0, %v1785_v21, 0.0  ;;  %v1792_v24 = vld [vmem:[%s1729_s26 + $0x68] sm:$0xff]  ;;  %v1795_v25 = vld [vmem:[%s1729_s26 + $0x60] sm:$0xff]  ;;  %v1802_v28 = vld [vmem:[%s1729_s26 + $0x78] sm:$0xff]  ;;  %p1593_p13 = pneg %p1592_p12 }
  0x1f   : > { %v230_v26 = vsel %vm190_vm0, %v1792_v24, 0.0  ;;  %v227_v27 = vsel %vm190_vm0, %v1795_v25, 0.0  ;;  %v236_v29 = vsel %vm190_vm0, %v1802_v28, 0.0  ;;  %v1807_v30 = vld [vmem:[%s1729_s26 + $0x70] sm:$0xff]  ;;  %v1810_v31 = vld [vmem:[%s1729_s26 + $0x88] sm:$0xff]  ;;  %v1813_v32 = vld [vmem:[%s1729_s26 + $0x80] sm:$0xff] }
  0x20   : > { %201 = vadd.xlane.f32.xlu1 %v200_v6  ;;  %195 = vadd.xlane.f32.xlu0 %v194_v7  ;;  %v233_v33 = vsel %vm190_vm0, %v1807_v30, 0.0  ;;  %v242_v34 = vsel %vm190_vm0, %v1810_v31, 0.0  ;;  %v239_v35 = vsel %vm190_vm0, %v1813_v32, 0.0  ;;  %v1822_v36 = vld [vmem:[%s1729_s26 + $0x98] sm:$0xff]  ;;  %v1825_v37 = vld [vmem:[%s1729_s26 + $0x90] sm:$0xff]  ;;  %v1832_v40 = vld [vmem:[%s1729_s26 + $0xa8] sm:$0xff]  ;;  %v287_v6 = vmul.f32 %v1735_v1, %v1735_v1 }
  0x21   : > { %v248_v38 = vsel %vm190_vm0, %v1822_v36, 0.0  ;;  %v245_v39 = vsel %vm190_vm0, %v1825_v37, 0.0  ;;  %v254_v41 = vsel %vm190_vm0, %v1832_v40, 0.0  ;;  %v1837_v42 = vld [vmem:[%s1729_s26 + $0xa0] sm:$0xff]  ;;  %v1840_v43 = vld [vmem:[%s1729_s26 + $0xb8] sm:$0xff]  ;;  %v1843_v44 = vld [vmem:[%s1729_s26 + $0xb0] sm:$0xff]  ;;  %v290_v7 = vmul.f32 %v1738_v2, %v1738_v2 }
  0x22   : > { %v251_v45 = vsel %vm190_vm0, %v1837_v42, 0.0  ;;  %v260_v46 = vsel %vm190_vm0, %v1840_v43, 0.0  ;;  %v1850_v47 = vld [vmem:[%s1729_s26 + $0xc8] sm:$0xff]  ;;  %v257_v48 = vsel %vm190_vm0, %v1843_v44, 0.0  ;;  %v1857_v50 = vld [vmem:[%s1729_s26 + $0xc0] sm:$0xff]  ;;  %v1860_v51 = vld [vmem:[%s1729_s26 + $0xd8] sm:$0xff] }
  0x23   : > { %v266_v49 = vsel %vm190_vm0, %v1850_v47, 0.0  ;;  %v1863_v52 = vld [vmem:[%s1729_s26 + $0xd0] sm:$0xff]  ;;  %v1866_v53 = vld [vmem:[%s1729_s26 + $0xe8] sm:$0xff]  ;;  %v263_v54 = vsel %vm190_vm0, %v1857_v50, 0.0  ;;  %v272_v55 = vsel %vm190_vm0, %v1860_v51, 0.0  ;;  %v1877_v58 = vld [vmem:[%s1729_s26 + $0xe0] sm:$0xff] }
  0x24   : > { %207 = vadd.xlane.f32.xlu1 %v206_v10  ;;  %204 = vadd.xlane.f32.xlu0 %v203_v11  ;;  %3159 = vst [vmem:[#allocation5_spill] sm:$0xff] %v1866_v53  ;;  %v269_v56 = vsel %vm190_vm0, %v1863_v52, 0.0  ;;  %v278_v57 = vsel %vm190_vm0, %v1866_v53, 0.0  ;;  %3160 = vst [vmem:[#allocation6_spill] sm:$0xff] %v1877_v58  ;;  %v1880_v59 = vld [vmem:[%s1729_s26 + $0xf8] sm:$0xff]  ;;  %v275_v60 = vsel %vm190_vm0, %v1877_v58, 0.0  ;;  %v289_v10 = vmul.f32 %v1732_v0, %v1732_v0 }
  0x25   : > { %3161 = vst [vmem:[#allocation7_spill] sm:$0xff] %v1880_v59  ;;  %v284_v61 = vsel %vm190_vm0, %v1880_v59, 0.0  ;;  %v1887_v62 = vld [vmem:[%s1729_s26 + $0xf0] sm:$0xff]  ;;  %v322_v4 = vsel %vm190_vm0, %v288_v3, 0.0  ;;  %v292_v11 = vmul.f32 %v1752_v8, %v1752_v8  ;;  %s1594_s14 = sshll.u32 %s1652_s13, 4  ;;  %s1595_s14 = int_to_ptr.vmem [resolvable:$false] %s1594_s14 }
  0x26   : > { %3162 = vst [vmem:[#allocation8_spill] sm:$0xff] %v1887_v62  ;;  %v281_v63 = vsel %vm190_vm0, %v1887_v62, 0.0  ;;  %s1596_s16 = scalar_lea.vmem %s1595_s14, 64  ;;  %p1597_p0 = scmp.lt.s32.totalorder %s1386_s3, %s1595_s14 }
  0x27   : > { %p1598_p1 = scmp.lt.s32.totalorder %s1596_s16, %s1590_s8 }
  0x28   : > { %213 = vadd.xlane.f32.xlu1 %v212_v14  ;;  %210 = vadd.xlane.f32.xlu0 %v209_v15  ;;  %v319_v14 = vsel %vm190_vm0, %v287_v6, 0.0  ;;  %v328_v15 = vsel %vm190_vm0, %v290_v7, 0.0  ;;  %v306_v7 = vmul.f32 %v1822_v36, %v1822_v36 }
  0x29   : > { %p1599_p2 = por %p1598_p1, %p1597_p0 }
  0x2b   : > { %p1600_p3 = pnand %p1599_p2, %p1593_p13 }
  0x2c   : > { %219 = vadd.xlane.f32.xlu1 %v218_v18  ;;  %216 = vadd.xlane.f32.xlu0 %v215_v19  ;;  %v325_v18 = vsel %vm190_vm0, %v289_v10, 0.0  ;;  %v291_v19 = vmul.f32 %v1755_v9, %v1755_v9 }
  0x30   : > { %225 = vadd.xlane.f32.xlu1 %v224_v22  ;;  %222 = vadd.xlane.f32.xlu0 %v221_v23  ;;  %v334_v22 = vsel %vm190_vm0, %v292_v11, 0.0  ;;  %v294_v23 = vmul.f32 %v1762_v12, %v1762_v12  ;;  %v305_v11 = vmul.f32 %v1825_v37, %v1825_v37 }
  0x34   : > { %231 = vadd.xlane.f32.xlu1 %v230_v26  ;;  %228 = vadd.xlane.f32.xlu0 %v227_v27  ;;  %v331_v26 = vsel %vm190_vm0, %v291_v19, 0.0  ;;  %v293_v27 = vmul.f32 %v1765_v13, %v1765_v13  ;;  %v307_v19 = vmul.f32 %v1837_v42, %v1837_v42 }
  0x38   : > { %237 = vadd.xlane.f32.xlu1 %v236_v29  ;;  %234 = vadd.xlane.f32.xlu0 %v233_v33  ;;  %v340_v29 = vsel %vm190_vm0, %v294_v23, 0.0  ;;  %v296_v33 = vmul.f32 %v1772_v16, %v1772_v16  ;;  %v310_v23 = vmul.f32 %v1840_v43, %v1840_v43 }
  0x3c   : > { %243 = vadd.xlane.f32.xlu1 %v242_v34  ;;  %240 = vadd.xlane.f32.xlu0 %v239_v35  ;;  %v337_v34 = vsel %vm190_vm0, %v293_v27, 0.0  ;;  %v295_v35 = vmul.f32 %v1775_v17, %v1775_v17  ;;  %v309_v27 = vmul.f32 %v1843_v44, %v1843_v44 }
  0x40   : > { %249 = vadd.xlane.f32.xlu1 %v248_v38  ;;  %246 = vadd.xlane.f32.xlu0 %v245_v39  ;;  %v346_v38 = vsel %vm190_vm0, %v296_v33, 0.0  ;;  %v298_v39 = vmul.f32 %v1782_v20, %v1782_v20  ;;  %v312_v33 = vmul.f32 %v1850_v47, %v1850_v47 }
  0x44   : > { %255 = vadd.xlane.f32.xlu1 %v254_v41  ;;  %252 = vadd.xlane.f32.xlu0 %v251_v45  ;;  %v343_v41 = vsel %vm190_vm0, %v295_v35, 0.0  ;;  %v297_v45 = vmul.f32 %v1785_v21, %v1785_v21  ;;  %v311_v35 = vmul.f32 %v1857_v50, %v1857_v50 }
  0x48   : > { %261 = vadd.xlane.f32.xlu1 %v260_v46  ;;  %258 = vadd.xlane.f32.xlu0 %v257_v48  ;;  %v352_v46 = vsel %vm190_vm0, %v298_v39, 0.0  ;;  %v300_v48 = vmul.f32 %v1792_v24, %v1792_v24  ;;  %v314_v39 = vmul.f32 %v1860_v51, %v1860_v51 }
  0x4c   : > { %267 = vadd.xlane.f32.xlu1 %v266_v49  ;;  %264 = vadd.xlane.f32.xlu0 %v263_v54  ;;  %v349_v49 = vsel %vm190_vm0, %v297_v45, 0.0  ;;  %v299_v54 = vmul.f32 %v1795_v25, %v1795_v25  ;;  %v313_v45 = vmul.f32 %v1863_v52, %v1863_v52 }
  0x50   : > { %273 = vadd.xlane.f32.xlu1 %v272_v55  ;;  %270 = vadd.xlane.f32.xlu0 %v269_v56  ;;  %v358_v55 = vsel %vm190_vm0, %v300_v48, 0.0  ;;  %v302_v56 = vmul.f32 %v1802_v28, %v1802_v28  ;;  %v316_v48 = vmul.f32 %v1866_v53, %v1866_v53 }
  0x54   : > { %279 = vadd.xlane.f32.xlu1 %v278_v57  ;;  %276 = vadd.xlane.f32.xlu0 %v275_v60  ;;  %v355_v57 = vsel %vm190_vm0, %v299_v54, 0.0  ;;  %v301_v60 = vmul.f32 %v1807_v30, %v1807_v30  ;;  %v315_v54 = vmul.f32 %v1877_v58, %v1877_v58 }
  0x56   : > { %v361_v3 = vsel %vm190_vm0, %v301_v60, 0.0  ;;  %v403_v60 = vsel %vm190_vm0, %v315_v54, 0.0 }
  0x58   : > { %285 = vadd.xlane.f32.xlu1 %v284_v61  ;;  %282 = vadd.xlane.f32.xlu0 %v281_v63  ;;  %v364_v61 = vsel %vm190_vm0, %v302_v56, 0.0  ;;  %v304_v63 = vmul.f32 %v1810_v31, %v1810_v31  ;;  %v318_v56 = vmul.f32 %v1880_v59, %v1880_v59 }
  0x5a   : > { %v370_v6 = vsel %vm190_vm0, %v304_v63, 0.0  ;;  %v412_v63 = vsel %vm190_vm0, %v318_v56, 0.0 }
  0x5c   : > { %323 = vadd.xlane.f32.xlu1 %v322_v4  ;;  %320 = vadd.xlane.f32.xlu0 %v319_v14  ;;  %v303_v4 = vmul.f32 %v1813_v32, %v1813_v32  ;;  %v376_v14 = vsel %vm190_vm0, %v306_v7, 0.0  ;;  %v1991_v7 = vstv %s1478_s27 }
  0x5d   : > { %3163 = vst [vmem:[#allocation9_spill] sm:$0xff] %v1991_v7 }
  0x5e   : > { %v367_v10 = vsel %vm190_vm0, %v303_v4, 0.0 }
  0x60   : > { %329 = vadd.xlane.f32.xlu1 %v328_v15  ;;  %326 = vadd.xlane.f32.xlu0 %v325_v18  ;;  %v308_v15 = vmul.f32 %v1832_v40, %v1832_v40  ;;  %v373_v18 = vsel %vm190_vm0, %v305_v11, 0.0 }
  0x64   : > { %335 = vadd.xlane.f32.xlu1 %v334_v22  ;;  %332 = vadd.xlane.f32.xlu0 %v331_v26  ;;  %v382_v22 = vsel %vm190_vm0, %v308_v15, 0.0  ;;  %v379_v26 = vsel %vm190_vm0, %v307_v19, 0.0 }
  0x68   : > { %341 = vadd.xlane.f32.xlu1 %v340_v29  ;;  %338 = vadd.xlane.f32.xlu0 %v337_v34  ;;  %v388_v29 = vsel %vm190_vm0, %v310_v23, 0.0  ;;  %v385_v34 = vsel %vm190_vm0, %v309_v27, 0.0 }
  0x6c   : > { %347 = vadd.xlane.f32.xlu1 %v346_v38  ;;  %344 = vadd.xlane.f32.xlu0 %v343_v41  ;;  %v394_v38 = vsel %vm190_vm0, %v312_v33, 0.0  ;;  %v391_v41 = vsel %vm190_vm0, %v311_v35, 0.0 }
  0x70   : > { %353 = vadd.xlane.f32.xlu1 %v352_v46  ;;  %350 = vadd.xlane.f32.xlu0 %v349_v49  ;;  %v400_v46 = vsel %vm190_vm0, %v314_v39, 0.0  ;;  %v397_v49 = vsel %vm190_vm0, %v313_v45, 0.0 }
  0x74   : > { %359 = vadd.xlane.f32.xlu1 %v358_v55  ;;  %356 = vadd.xlane.f32.xlu0 %v355_v57  ;;  %v406_v55 = vsel %vm190_vm0, %v316_v48, 0.0  ;;  %v994_v57 = vlaneseq }
  0x78   : > { %365 = vadd.xlane.f32.xlu1 %v364_v61  ;;  %362 = vadd.xlane.f32.xlu0 %v361_v3  ;;  %v317_v61 = vmul.f32 %v1887_v62, %v1887_v62  ;;  %v1986_v3 = vshrl.u32 %v994_v57, 7 }
  0x7a   : > { %v409_v4 = vsel %vm190_vm0, %v317_v61, 0.0  ;;  %v1028_v15 = vadd.s32 %v1991_v7, %v1986_v3  ;;  %v996_v19 = vadd.s32 8, %v1986_v3  ;;  %v999_v23 = vadd.s32 32, %v1986_v3 }
  0x7b   : > { %v1001_v39 = vadd.s32 48, %v1986_v3  ;;  %v1004_v56 = vadd.s32 72, %v1986_v3 }
  0x7c   : > { %371 = vadd.xlane.f32.xlu1 %v370_v6  ;;  %368 = vadd.xlane.f32.xlu0 %v367_v10  ;;  %v997_v6 = vadd.s32 16, %v1986_v3  ;;  %vm1060_vm2 = vcmp.lt.s32.totalorder %v1028_v15, 300  ;;  %v1029_v33 = vadd.s32 %v1991_v7, %v996_v19  ;;  %v1032_v35 = vadd.s32 %v1991_v7, %v999_v23 }
  0x7e   : > { %vm1061_vm4 = vcmp.lt.s32.totalorder %v1029_v33, 300  ;;  %vm1064_vm6 = vcmp.lt.s32.totalorder %v1032_v35, 300  ;;  %v1003_v33 = vadd.s32 64, %v1986_v3  ;;  %v1005_v35 = vadd.s32 80, %v1986_v3 }
  0x7f   : > { %v1258_v15 = vsel %vm1061_vm4, %v1745_v5, -inf  ;;  %v1160_v23 = vsel %vm1064_vm6, %v1755_v9, inf  ;;  %v1261_v62 = vsel %vm1064_vm6, %v1755_v9, -inf }
  0x80   : > { %377 = vadd.xlane.f32.xlu1 %v376_v14  ;;  %374 = vadd.xlane.f32.xlu0 %v373_v18  ;;  %v1030_v14 = vadd.s32 %v1991_v7, %v997_v6  ;;  %v998_v18 = vadd.s32 24, %v1986_v3 }
  0x82   : > { %vm1062_vm1 = vcmp.lt.s32.totalorder %v1030_v14, 300  ;;  %v1157_v14 = vsel %vm1061_vm4, %v1745_v5, inf }
  0x83   : > { %v1259_v45 = vsel %vm1062_vm1, %v1732_v0, -inf }
  0x84   : > { %383 = vadd.xlane.f32.xlu1 %v382_v22  ;;  %380 = vadd.xlane.f32.xlu0 %v379_v26  ;;  %v1000_v22 = vadd.s32 40, %v1986_v3 }
  0x88   : > { %389 = vadd.xlane.f32.xlu1 %v388_v29  ;;  %386 = vadd.xlane.f32.xlu0 %v385_v34  ;;  %v1031_v29 = vadd.s32 %v1991_v7, %v998_v18  ;;  %v1033_v34 = vadd.s32 %v1991_v7, %v1000_v22 }
  0x8a   : > { %vm1063_vm3 = vcmp.lt.s32.totalorder %v1031_v29, 300  ;;  %vm1065_vm5 = vcmp.lt.s32.totalorder %v1033_v34, 300 }
  0x8b   : > { %v1159_v6 = vsel %vm1063_vm3, %v1738_v2, inf  ;;  %v1161_v19 = vsel %vm1065_vm5, %v1752_v8, inf  ;;  %v1262_v22 = vsel %vm1065_vm5, %v1752_v8, -inf }
  0x8c   : > { %395 = vadd.xlane.f32.xlu1 %v394_v38  ;;  %392 = vadd.xlane.f32.xlu0 %v391_v41  ;;  %v1002_v38 = vadd.s32 56, %v1986_v3  ;;  %v1158_v41 = vsel %vm1062_vm1, %v1732_v0, inf  ;;  %v1194_v59 = vsel %vm190_vm0, %v1161_v19, inf  ;;  %v2065_v29 = vsel %vm190_vm0, %v1262_v22, -inf }
  0x8d   : > { %v2025_v57 = vsel %vm190_vm0, %v1158_v41, inf  ;;  %v1006_v41 = vadd.s32 88, %v1986_v3 }
  0x8f   : > { %v1039_v22 = vadd.s32 %v1991_v7, %v1006_v41 }
  0x90   : > { %401 = vadd.xlane.f32.xlu1 %v400_v46  ;;  %398 = vadd.xlane.f32.xlu0 %v397_v49  ;;  %v1156_v46 = vsel %vm1060_vm2, %v1735_v1, inf  ;;  %v1257_v49 = vsel %vm1060_vm2, %v1735_v1, -inf }
  0x91   : > { %v2031_v61 = vsel %vm190_vm0, %v1156_v46, inf  ;;  %v1189_v46 = vsel %vm190_vm0, %v1157_v14, inf  ;;  %vm1071_vm11 = vcmp.lt.s32.totalorder %v1039_v22, 300 }
  0x92   : > { %v1195_v53 = vmin.f32 %v1189_v46, %v1194_v59 }
  0x94   : > { %407 = vadd.xlane.f32.xlu1 %v406_v55  ;;  %404 = vadd.xlane.f32.xlu0 %v403_v60  ;;  %v1035_v55 = vadd.s32 %v1991_v7, %v1002_v38  ;;  %v2028_v60 = vsel %vm190_vm0, %v1259_v45, -inf  ;;  %v1260_v38 = vsel %vm1063_vm3, %v1738_v2, -inf  ;;  %v2055_v45 = vsel %vm190_vm0, %v1159_v6, inf }
  0x95   : > { %v2079_v19 = vsel %vm190_vm0, %v1260_v38, -inf }
  0x96   : > { %vm1067_vm7 = vcmp.lt.s32.totalorder %v1035_v55, 300  ;;  %v2068_v55 = vsel %vm190_vm0, %v1160_v23, inf  ;;  %v1008_v23 = vadd.s32 104, %v1986_v3 }
  0x97   : > { %v1163_v6 = vsel %vm1067_vm7, %v1762_v12, inf  ;;  %v1264_v14 = vsel %vm1067_vm7, %v1762_v12, -inf }
  0x98   : > { %413 = vadd.xlane.f32.xlu1 %v412_v63  ;;  %410 = vadd.xlane.f32.xlu0 %v409_v4  ;;  %v1034_v63 = vadd.s32 %v1991_v7, %v1001_v39  ;;  %v2035_v4 = vsel %vm190_vm0, %v1257_v49, -inf  ;;  %v1037_v39 = vadd.s32 %v1991_v7, %v1004_v56  ;;  %v2059_v49 = vsel %vm190_vm0, %v1258_v15, -inf }
  0x99   : > { %v1036_v15 = vadd.s32 %v1991_v7, %v1003_v33  ;;  %v1198_v38 = vsel %vm190_vm0, %v1163_v6, inf }
  0x9a   : > { %vm1066_vm8 = vcmp.lt.s32.totalorder %v1034_v63, 300  ;;  %vm1069_vm9 = vcmp.lt.s32.totalorder %v1037_v39, 300  ;;  %v1041_v63 = vadd.s32 %v1991_v7, %v1008_v23  ;;  %v1199_v6 = vmin.f32 %v2055_v45, %v1198_v38 }
  0x9b   : > { %v1162_v33 = vsel %vm1066_vm8, %v1765_v13, inf  ;;  %v1263_v41 = vsel %vm1066_vm8, %v1765_v13, -inf  ;;  %v1165_v46 = vsel %vm1069_vm9, %v1772_v16, inf  ;;  %vm1068_vm10 = vcmp.lt.s32.totalorder %v1036_v15, 300 }
  0x9c   : > { %v1297_v15 = vsel %vm190_vm0, %v1263_v41, -inf  ;;  %v1167_v45 = vsel %vm1071_vm11, %v1782_v20, inf  ;;  %vm1073_vm13 = vcmp.lt.s32.totalorder %v1041_v63, 300 }
  0x9d   : > { %v1298_v38 = vmax.f32 %v2028_v60, %v1297_v15 }
  0xa5   : > { %v1993_v10 = vpop.xlane.xlu1 %198  ;;  %v1995_v11 = vpop.xlane.xlu0 %192 }
  0xa6   : > { %3164 = vst [vmem:[#allocation10_spill] sm:$0xff] %v1995_v11 }
  0xa9   : > { %v2004_v26 = vpop.xlane.xlu1 %201  ;;  %v2006_v27 = vpop.xlane.xlu0 %195 }
  0xaa   : > { %3165 = vst [vmem:[#allocation11_spill] sm:$0xff] %v2004_v26 }
  0xad   : > { %v2017_v48 = vpop.xlane.xlu1 %207  ;;  %v2020_v54 = vpop.xlane.xlu0 %204 }
  0xae   : > { %3166 = vst [vmem:[#allocation12_spill] sm:$0xff] %v2017_v48  ;;  %3167 = vst [vmem:[#allocation13_spill] sm:$0xff] %v2020_v54 }
  0xb1   : > { %v2041_v18 = vpop.xlane.xlu1 %213  ;;  %v2048_v34 = vpop.xlane.xlu0 %210 }
  0xb2   : > { %3168 = vst [vmem:[#allocation14_spill] sm:$0xff] %v2041_v18  ;;  %3169 = vst [vmem:[#allocation15_spill] sm:$0xff] %v2048_v34  ;;  %v1293_v34 = vsel %vm190_vm0, %v1261_v62, -inf  ;;  %v2092_v18 = vsel %vm190_vm0, %v1264_v14, -inf  ;;  %v1038_v62 = vadd.s32 %v1991_v7, %v1005_v35  ;;  %v1266_v35 = vsel %vm1069_vm9, %v1772_v16, -inf }
  0xb3   : > { %v1300_v14 = vmax.f32 %v2079_v19, %v2092_v18  ;;  %v1009_v19 = vadd.s32 112, %v1986_v3  ;;  %v1303_v41 = vsel %vm190_vm0, %v1266_v35, -inf }
  0xb4   : > { %vm1070_vm12 = vcmp.lt.s32.totalorder %v1038_v62, 300  ;;  %v1268_v62 = vsel %vm1071_vm11, %v1782_v20, -inf }
  0xb5   : > { %v2070_v56 = vpop.xlane.xlu1 %219  ;;  %v2076_v58 = vpop.xlane.xlu0 %216 }
  0xb6   : > { %3170 = vst [vmem:[#allocation16_spill] sm:$0xff] %v2070_v56  ;;  %3171 = vst [vmem:[#allocation17_spill] sm:$0xff] %v2076_v58  ;;  %v1296_v56 = vmax.f32 %v2059_v49, %v2065_v29  ;;  %v1193_v58 = vmin.f32 %v2031_v61, %v2068_v55  ;;  %v1007_v49 = vadd.s32 96, %v1986_v3  ;;  %v1294_v61 = vmax.f32 %v2035_v4, %v1293_v34 }
  0xb7   : > { %v1196_v55 = vsel %vm190_vm0, %v1162_v33, inf  ;;  %v1265_v4 = vsel %vm1068_vm10, %v1775_v17, -inf  ;;  %v1010_v34 = vadd.s32 120, %v1986_v3 }
  0xb8   : > { %v1040_v18 = vadd.s32 %v1991_v7, %v1007_v49  ;;  %v1197_v23 = vmin.f32 %v2025_v57, %v1196_v55  ;;  %v1301_v54 = vsel %vm190_vm0, %v1265_v4, -inf  ;;  %v1206_v49 = vsel %vm190_vm0, %v1167_v45, inf }
  0xb9   : > { %v2096_v59 = vpop.xlane.xlu1 %225  ;;  %v2102_v29 = vpop.xlane.xlu0 %222  ;;  %v1267_v57 = vsel %vm1070_vm12, %v1785_v21, -inf  ;;  %v1043_v60 = vadd.s32 %v1991_v7, %v1010_v34  ;;  %v2146_v15 = vmax.f32 %v1296_v56, %v1303_v41  ;;  %v2150_v4 = vmax.f32 %v1294_v61, %v1301_v54 }
  0xba   : > { %3172 = vst [vmem:[#allocation18_spill] sm:$0xff] %v2096_v59  ;;  %3173 = vst [vmem:[#allocation19_spill] sm:$0xff] %v2102_v29  ;;  %v1202_v59 = vsel %vm190_vm0, %v1165_v46, inf  ;;  %v1164_v29 = vsel %vm1068_vm10, %v1775_v17, inf  ;;  %vm1072_vm14 = vcmp.lt.s32.totalorder %v1040_v18, 300  ;;  %v1307_v34 = vsel %vm190_vm0, %v1268_v62, -inf }
  0xbb   : > { %v2128_v46 = vmin.f32 %v1195_v53, %v1202_v59  ;;  %v1169_v53 = vsel %vm1073_vm13, %v1792_v24, inf  ;;  %v1042_v59 = vadd.s32 %v1991_v7, %v1009_v19  ;;  %v2153_v45 = vmin.f32 %v1199_v6, %v1206_v49 }
  0xbc   : > { %v1305_v48 = vsel %vm190_vm0, %v1267_v57, -inf  ;;  %v1011_v19 = vadd.s32 128, %v1986_v3  ;;  %v2159_v26 = vsel %vm190_vm0, %v1169_v53, inf  ;;  %v1270_v56 = vsel %vm1073_vm13, %v1792_v24, -inf }
  0xbd   : > { %v2117_v33 = vpop.xlane.xlu1 %231  ;;  %v2123_v39 = vpop.xlane.xlu0 %228  ;;  %vm1075_vm15 = vcmp.lt.s32.totalorder %v1043_v60, 300  ;;  %v1269_v61 = vsel %vm1072_vm14, %v1795_v25, -inf  ;;  %vm1074_vm1 = vcmp.lt.s32.totalorder %v1042_v59, 300  ;;  %v2173_v41 = vmax.f32 %v1300_v14, %v1307_v34 }
  0xbe   : > { %3174 = vst [vmem:[#allocation20_spill] sm:$0xff] %v2117_v33  ;;  %3175 = vst [vmem:[#allocation21_spill] sm:$0xff] %v2123_v39  ;;  %v1200_v33 = vsel %vm190_vm0, %v1164_v29, inf  ;;  %v1166_v39 = vsel %vm1070_vm12, %v1785_v21, inf  ;;  %v1012_v29 = vadd.s32 136, %v1986_v3  ;;  %v2177_v62 = vmax.f32 %v1298_v38, %v1305_v48 }
  0xbf   : > { %v2148_v35 = vmin.f32 %v1193_v58, %v1200_v33  ;;  %v1168_v58 = vsel %vm1072_vm14, %v1795_v25, inf  ;;  %v1014_v33 = vadd.s32 152, %v1986_v3  ;;  %v1013_v49 = vadd.s32 144, %v1986_v3 }
  0xc0   : > { %v1045_v6 = vadd.s32 %v1991_v7, %v1012_v29  ;;  %v1311_v57 = vsel %vm190_vm0, %v1270_v56, -inf  ;;  %v1171_v18 = vsel %vm1075_vm15, %v1802_v28, inf  ;;  %v1272_v60 = vsel %vm1075_vm15, %v1802_v28, -inf }
  0xc1   : > { %v2138_v55 = vpop.xlane.xlu1 %237  ;;  %v2144_v22 = vpop.xlane.xlu0 %234  ;;  %v1044_v53 = vadd.s32 %v1991_v7, %v1011_v19  ;;  %v1211_v29 = vmin.f32 %v2128_v46, %v2159_v26  ;;  %v1208_v14 = vsel %vm190_vm0, %v1168_v58, inf  ;;  %v1170_v48 = vsel %vm1074_vm1, %v1807_v30, inf }
  0xc2   : > { %3176 = vst [vmem:[#allocation22_spill] sm:$0xff] %v2138_v55  ;;  %3177 = vst [vmem:[#allocation23_spill] sm:$0xff] %v2144_v22  ;;  %v1204_v55 = vsel %vm190_vm0, %v1166_v39, inf  ;;  %vm1077_vm2 = vcmp.lt.s32.totalorder %v1045_v6, 300  ;;  %v1047_v34 = vadd.s32 %v1991_v7, %v1014_v33  ;;  %v1016_v19 = vadd.s32 168, %v1986_v3 }
  0xc3   : > { %v2175_v63 = vmin.f32 %v1197_v23, %v1204_v55  ;;  %v2188_v23 = vsel %vm190_vm0, %v1269_v61, -inf  ;;  %v1271_v55 = vsel %vm1074_vm1, %v1807_v30, -inf  ;;  %v1214_v26 = vsel %vm190_vm0, %v1171_v18, inf }
  0xc4   : > { %v1315_v46 = vsel %vm190_vm0, %v1272_v60, -inf  ;;  %v1046_v58 = vadd.s32 %v1991_v7, %v1013_v49  ;;  %v1015_v61 = vadd.s32 160, %v1986_v3  ;;  %v1209_v59 = vmin.f32 %v2148_v35, %v1208_v14 }
  0xc5   : > { %v2165_v54 = vpop.xlane.xlu1 %243  ;;  %v2171_v39 = vpop.xlane.xlu0 %240  ;;  %v1310_v6 = vmax.f32 %v2150_v4, %v2188_v23  ;;  %vm1076_vm3 = vcmp.lt.s32.totalorder %v1044_v53, 300  ;;  %v1212_v33 = vsel %vm190_vm0, %v1170_v48, inf  ;;  %v1173_v18 = vsel %vm1077_vm2, %v1810_v31, inf }
  0xc6   : > { %3178 = vst [vmem:[#allocation24_spill] sm:$0xff] %v2165_v54  ;;  %3179 = vst [vmem:[#allocation25_spill] sm:$0xff] %v2171_v39  ;;  %v1274_v60 = vsel %vm1077_vm2, %v1810_v31, -inf  ;;  %v1215_v49 = vmin.f32 %v2153_v45, %v1214_v26  ;;  %vm1079_vm4 = vcmp.lt.s32.totalorder %v1047_v34, 300  ;;  %v1049_v35 = vadd.s32 %v1991_v7, %v1016_v19 }
  0xc7   : > { %v1172_v4 = vsel %vm1076_vm3, %v1813_v32, inf  ;;  %vm1078_vm5 = vcmp.lt.s32.totalorder %v1046_v58, 300  ;;  %v1018_v14 = vadd.s32 184, %v1986_v3  ;;  %v1213_v48 = vmin.f32 %v2175_v63, %v1212_v33 }
  0xc8   : > { %v1218_v45 = vsel %vm190_vm0, %v1173_v18, inf  ;;  %v1273_v34 = vsel %vm1076_vm3, %v1813_v32, -inf  ;;  %v1175_v19 = vsel %vm1079_vm4, %v1822_v36, inf  ;;  %v1276_v26 = vsel %vm1079_vm4, %v1822_v36, -inf }
  0xc9   : > { %v2192_v38 = vpop.xlane.xlu1 %249  ;;  %v2198_v56 = vpop.xlane.xlu0 %246  ;;  %v1174_v63 = vsel %vm1078_vm5, %v1825_v37, inf  ;;  %vm1081_vm6 = vcmp.lt.s32.totalorder %v1049_v35, 300  ;;  %v1020_v53 = vadd.s32 200, %v1986_v3  ;;  %v1019_v33 = vadd.s32 192, %v1986_v3 }
  0xca   : > { %3180 = vst [vmem:[#allocation26_spill] sm:$0xff] %v2192_v38  ;;  %3181 = vst [vmem:[#allocation27_spill] sm:$0xff] %v2198_v56  ;;  %v1312_v38 = vmax.f32 %v2146_v15, %v1311_v57  ;;  %v1313_v56 = vsel %vm190_vm0, %v1271_v55, -inf  ;;  %v1316_v15 = vmax.f32 %v2173_v41, %v1315_v46  ;;  %v1048_v57 = vadd.s32 %v1991_v7, %v1015_v61 }
  0xcb   : > { %v1314_v55 = vmax.f32 %v2177_v62, %v1313_v56  ;;  %v1319_v41 = vsel %vm190_vm0, %v1274_v60, -inf  ;;  %v1017_v46 = vadd.s32 176, %v1986_v3  ;;  %v1216_v61 = vsel %vm190_vm0, %v1172_v4, inf }
  0xcc   : > { %v1275_v62 = vsel %vm1078_vm5, %v1825_v37, -inf  ;;  %vm1080_vm7 = vcmp.lt.s32.totalorder %v1048_v57, 300  ;;  %v1051_v56 = vadd.s32 %v1991_v7, %v1018_v14  ;;  %v2240_v18 = vmin.f32 %v1211_v29, %v1218_v45 }
  0xcd   : > { %v2212_v39 = vpop.xlane.xlu1 %255  ;;  %v2221_v23 = vpop.xlane.xlu0 %252  ;;  %v2242_v60 = vmax.f32 %v1312_v38, %v1319_v41  ;;  %v1222_v4 = vsel %vm190_vm0, %v1175_v19, inf  ;;  %v1177_v54 = vsel %vm1081_vm6, %v1832_v40, inf  ;;  %v1050_v14 = vadd.s32 %v1991_v7, %v1017_v46 }
  0xce   : > { %3182 = vst [vmem:[#allocation28_spill] sm:$0xff] %v2212_v39  ;;  %3183 = vst [vmem:[#allocation29_spill] sm:$0xff] %v2221_v23  ;;  %v2246_v23 = vmin.f32 %v1209_v59, %v1216_v61  ;;  %v1323_v39 = vsel %vm190_vm0, %v1276_v26, -inf  ;;  %v1220_v29 = vsel %vm190_vm0, %v1174_v63, inf  ;;  %v1321_v38 = vsel %vm190_vm0, %v1275_v62, -inf }
  0xcf   : > { %v1278_v45 = vsel %vm1081_vm6, %v1832_v40, -inf  ;;  %v1176_v59 = vsel %vm1080_vm7, %v1837_v42, inf  ;;  %vm1083_vm8 = vcmp.lt.s32.totalorder %v1051_v56, 300  ;;  %v1053_v41 = vadd.s32 %v1991_v7, %v1020_v53 }
  0xd0   : > { %v1022_v19 = vadd.s32 216, %v1986_v3  ;;  %v2265_v46 = vmin.f32 %v1215_v49, %v1222_v4  ;;  %v2267_v61 = vmax.f32 %v1316_v15, %v1323_v39  ;;  %v1226_v63 = vsel %vm190_vm0, %v1177_v54, inf }
  0xd1   : > { %v2232_v58 = vpop.xlane.xlu1 %261  ;;  %v2252_v22 = vpop.xlane.xlu0 %258  ;;  %v1327_v35 = vsel %vm190_vm0, %v1278_v45, -inf  ;;  %v1224_v62 = vsel %vm190_vm0, %v1176_v59, inf  ;;  %v1021_v53 = vadd.s32 208, %v1986_v3  ;;  %vm1082_vm9 = vcmp.lt.s32.totalorder %v1050_v14, 300 }
  0xd2   : > { %3184 = vst [vmem:[#allocation30_spill] sm:$0xff] %v2232_v58  ;;  %v1317_v58 = vsel %vm190_vm0, %v1273_v34, -inf  ;;  %3185 = vst [vmem:[#allocation31_spill] sm:$0xff] %v2252_v22  ;;  %v1052_v34 = vadd.s32 %v1991_v7, %v1019_v33  ;;  %v2275_v22 = vmin.f32 %v1213_v48, %v1220_v29  ;;  %v2277_v33 = vmax.f32 %v1314_v55, %v1321_v38 }
  0xd3   : > { %v1318_v26 = vmax.f32 %v1310_v6, %v1317_v58  ;;  %3187 = vst [vmem:[#allocation33_spill] sm:$0xff] %v2265_v46  ;;  %3188 = vst [vmem:[#allocation34_spill] sm:$0xff] %v2267_v61  ;;  %v1179_v6 = vsel %vm1083_vm8, %v1840_v43, inf  ;;  %v1227_v39 = vmin.f32 %v2240_v18, %v1226_v63  ;;  %vm1085_vm10 = vcmp.lt.s32.totalorder %v1053_v41, 300 }
  0xd4   : > { %3189 = vst [vmem:[#allocation35_spill] sm:$0xff] %v2275_v22  ;;  %3190 = vst [vmem:[#allocation36_spill] sm:$0xff] %v2277_v33  ;;  %vm1084_vm11 = vcmp.lt.s32.totalorder %v1052_v34, 300  ;;  %v1055_v54 = vadd.s32 %v1991_v7, %v1022_v19  ;;  %v1328_v57 = vmax.f32 %v2242_v60, %v1327_v35  ;;  %v1225_v48 = vmin.f32 %v2246_v23, %v1224_v62 }
  0xd5   : > { %v2254_v11 = vpop.xlane.xlu1 %267  ;;  %v2283_v49 = vpop.xlane.xlu0 %264  ;;  %v1280_v58 = vsel %vm1083_vm8, %v1840_v43, -inf  ;;  %v2293_v4 = vsel %vm190_vm0, %v1179_v6, inf  ;;  %v1178_v18 = vsel %vm1082_vm9, %v1843_v44, inf  ;;  %v1279_v14 = vsel %vm1082_vm9, %v1843_v44, -inf }
  0xd6   : > { %3186 = vst [vmem:[#allocation32_spill] sm:$0xff] %v2254_v11  ;;  %v1277_v11 = vsel %vm1080_vm7, %v1837_v42, -inf  ;;  %3191 = vst [vmem:[#allocation37_spill] sm:$0xff] %v2293_v4  ;;  %v1054_v29 = vadd.s32 %v1991_v7, %v1021_v53  ;;  %v1181_v38 = vsel %vm1085_vm10, %v1850_v47, inf  ;;  %v1282_v60 = vsel %vm1085_vm10, %v1850_v47, -inf }
  0xd7   : > { %v1325_v55 = vsel %vm190_vm0, %v1277_v11, -inf  ;;  %v1180_v23 = vsel %vm1084_vm11, %v1857_v50, inf  ;;  %v1281_v11 = vsel %vm1084_vm11, %v1857_v50, -inf  ;;  %v2303_v56 = vsel %vm190_vm0, %v1280_v58, -inf }
  0xd8   : > { %v1326_v45 = vmax.f32 %v1318_v26, %v1325_v55  ;;  %3192 = vst [vmem:[#allocation38_spill] sm:$0xff] %v2303_v56  ;;  %vm1087_vm12 = vcmp.lt.s32.totalorder %v1055_v54, 300  ;;  %v1024_v59 = vadd.s32 232, %v1986_v3  ;;  %v2311_v19 = vsel %vm190_vm0, %v1178_v18, inf }
  0xd9   : > { %v2285_v15 = vpop.xlane.xlu1 %273  ;;  %v2306_v41 = vpop.xlane.xlu0 %270  ;;  %3193 = vst [vmem:[#allocation39_spill] sm:$0xff] %v2311_v19  ;;  %v2314_v63 = vsel %vm190_vm0, %v1279_v14, -inf  ;;  %v1023_v35 = vadd.s32 224, %v1986_v3  ;;  %v1234_v26 = vsel %vm190_vm0, %v1181_v38, inf  ;;  %v1335_v62 = vsel %vm190_vm0, %v1282_v60, -inf }
  0xda   : > { %3194 = vst [vmem:[#allocation40_spill] sm:$0xff] %v2314_v63  ;;  %v1232_v53 = vsel %vm190_vm0, %v1180_v23, inf  ;;  %v1333_v6 = vsel %vm190_vm0, %v1281_v11, -inf  ;;  %v1183_v18 = vsel %vm1087_vm12, %v1860_v51, inf  ;;  %vm1086_vm13 = vcmp.lt.s32.totalorder %v1054_v29, 300 }
  0xdb   : > { %v1026_v14 = vadd.s32 248, %v1986_v3  ;;  %v1284_v23 = vsel %vm1087_vm12, %v1860_v51, -inf  ;;  %v2335_v11 = vadd.s32 %v1991_v7, %v1024_v59  ;;  %v2337_v34 = vmin.f32 %v1227_v39, %v1234_v26 }
  0xdc   : > { %v2339_v58 = vmax.f32 %v1328_v57, %v1335_v62  ;;  %v2341_v56 = vmin.f32 %v1225_v48, %v1232_v53  ;;  %v2343_v29 = vmax.f32 %v1326_v45, %v1333_v6  ;;  %v2348_v38 = vsel %vm190_vm0, %v1183_v18, inf }
  0xdd   : > { %v2321_v55 = vpop.xlane.xlu1 %279  ;;  %3195 = vst [vmem:[#allocation41_spill] sm:$0xff] %v2335_v11  ;;  %3196 = vst [vmem:[#allocation42_spill] sm:$0xff] %v2337_v34  ;;  %v2345_v61 = vpop.xlane.xlu0 %276  ;;  %v2351_v60 = vsel %vm1086_vm13, %v1863_v52, inf  ;;  %v2354_v54 = vsel %vm1086_vm13, %v1863_v52, -inf  ;;  %v2357_v39 = vadd.s32 %v1991_v7, %v1023_v35  ;;  %v2360_v57 = vsel %vm190_vm0, %v1284_v23, -inf  ;;  %v3207_v23 = vld [vmem:[#allocation10_spill] sm:$0xff] }
  0xde   : > { %3197 = vst [vmem:[#allocation43_spill] sm:$0xff] %v2339_v58  ;;  %3198 = vst [vmem:[#allocation44_spill] sm:$0xff] %v2341_v56  ;;  %v2363_v48 = vadd.s32 %v1991_v7, %v1026_v14  ;;  %v2366_v45 = vadd.s32 240, %v1986_v3  ;;  %v512_v59 = vmul.f32 20.0, %v1745_v5  ;;  %v2372_v62 = vmul.f32 20.0, %v1735_v1  ;;  %v3211_v58 = vld [vmem:[#allocation12_spill] sm:$0xff] }
  0xdf   : > { %3199 = vst [vmem:[#allocation45_spill] sm:$0xff] %v2343_v29  ;;  %3200 = vst [vmem:[#allocation46_spill] sm:$0xff] %v2348_v38  ;;  %v2375_v53 = vmul.f32 20.0, %v1738_v2  ;;  %v2378_v35 = vmul.f32 20.0, %v1732_v0  ;;  %v2381_v6 = vmul.f32 20.0, %v1752_v8  ;;  %v2384_v18 = vmul.f32 20.0, %v1755_v9 }
  0xe0   : > { %3201 = vst [vmem:[#allocation47_spill] sm:$0xff] %v2351_v60  ;;  %3202 = vst [vmem:[#allocation48_spill] sm:$0xff] %v2354_v54  ;;  %v2387_v3 = vmul.f32 20.0, %v1762_v12  ;;  %v2390_v5 = vmul.f32 20.0, %v1765_v13  ;;  %v2393_v1 = vmul.f32 20.0, %v1772_v16  ;;  %v2396_v2 = vmul.f32 20.0, %v1775_v17 }
  0xe1   : > { %3203 = vst [vmem:[#allocation49_spill] sm:$0xff] %v2357_v39  ;;  %3204 = vst [vmem:[#allocation50_spill] sm:$0xff] %v2360_v57  ;;  %v2369_v26 = vpop.xlane.xlu1 %285  ;;  %v2399_v0 = vmul.f32 20.0, %v1782_v20  ;;  %v2402_v8 = vmul.f32 20.0, %v1785_v21  ;;  %v2405_v9 = vmul.f32 20.0, %v1792_v24  ;;  %v2407_v12 = vpop.xlane.xlu0 %282  ;;  %v2410_v13 = vmul.f32 20.0, %v1795_v25 }
  0xe2   : > { %3205 = vst [vmem:[#allocation51_spill] sm:$0xff] %v2363_v48  ;;  %3206 = vst [vmem:[#allocation52_spill] sm:$0xff] %v2366_v45  ;;  %v2413_v16 = vmul.f32 20.0, %v1802_v28  ;;  %v2416_v17 = vmul.f32 20.0, %v1807_v30  ;;  %v2419_v20 = vmul.f32 20.0, %v1810_v31  ;;  %v2422_v21 = vmul.f32 20.0, %v1813_v32 }
  0xe3   : > { %v2425_v24 = vmul.f32 20.0, %v1822_v36  ;;  %v2428_v14 = vmul.f32 20.0, %v1825_v37  ;;  %v2431_v25 = vmul.f32 20.0, %v1832_v40  ;;  %v416_v28 = vmul.f32 10.0, %v2006_v27  ;;  %v3210_v27 = vld [vmem:[#allocation11_spill] sm:$0xff]  ;;  %v3227_v39 = vld [vmem:[#allocation8_spill] sm:$0xff] }
  0xe4   : > { %v2435_v30 = vmul.f32 20.0, %v1837_v42  ;;  %v2438_v31 = vmul.f32 20.0, %v1840_v43  ;;  %v2441_v32 = vmul.f32 20.0, %v1843_v44  ;;  %v417_v36 = vmul.f32 10.0, %v1993_v10  ;;  %v3213_v44 = vld [vmem:[#allocation13_spill] sm:$0xff]  ;;  %v3214_v10 = vld [vmem:[#allocation14_spill] sm:$0xff] }
  0xe5   : > { %v415_v29 = vmul.f32 10.0, %v3207_v23  ;;  %v324_v37 = vpop.xlane.xlu1 %323  ;;  %v2446_v56 = vmul.f32 20.0, %v1850_v47  ;;  %v2449_v40 = vmul.f32 20.0, %v1857_v50  ;;  %v418_v42 = vmul.f32 10.0, %v3210_v27  ;;  %v3215_v23 = vld [vmem:[#allocation15_spill] sm:$0xff]  ;;  %v3217_v50 = vld [vmem:[#allocation16_spill] sm:$0xff]  ;;  %v321_v4 = vpop.xlane.xlu0 %320 }
  0xe6   : > { %v420_v34 = vmul.f32 10.0, %v3211_v58  ;;  %v448_v43 = vadd.f32 %v416_v28, %v324_v37  ;;  %v2454_v63 = vmul.f32 20.0, %v1860_v51  ;;  %v419_v33 = vmul.f32 10.0, %v3213_v44  ;;  %v3218_v58 = vld [vmem:[#allocation5_spill] sm:$0xff]  ;;  %v3220_v51 = vld [vmem:[#allocation6_spill] sm:$0xff]  ;;  %v3224_v54 = vld [vmem:[#allocation7_spill] sm:$0xff] }
  0xe7   : > { %3208 = vst [vmem:[#allocation10_spill] sm:$0xff] %v2446_v56  ;;  %3209 = vst [vmem:[#allocation53_spill] sm:$0xff] %v2449_v40  ;;  %v422_v19 = vmul.f32 10.0, %v3214_v10  ;;  %v2459_v22 = vmul.f32 10.0, %v3215_v23  ;;  %v2462_v47 = vmul.f32 20.0, %v1863_v52  ;;  %v2465_v57 = vmul.f32 10.0, %v3217_v50 }
  0xe8   : > { %3212 = vst [vmem:[#allocation11_spill] sm:$0xff] %v2454_v63  ;;  %v480_v27 = vadd.f32 525.0, %v448_v43  ;;  %v2468_v28 = vmul.f32 20.0, %v3218_v58  ;;  %v2471_v37 = vmul.f32 20.0, %v3220_v51  ;;  %v3222_v44 = vld [vmem:[#allocation17_spill] sm:$0xff]  ;;  %v3223_v10 = vld [vmem:[#allocation18_spill] sm:$0xff]  ;;  %v447_v38 = vadd.f32 %v415_v29, %v321_v4 }
  0xe9   : > { %3216 = vst [vmem:[#allocation12_spill] sm:$0xff] %v2462_v47  ;;  %v2474_v46 = vmul.f32 10.0, %v3222_v44  ;;  %v2477_v23 = vmul.f32 10.0, %v3223_v10  ;;  %v330_v52 = vpop.xlane.xlu1 %329  ;;  %v2480_v60 = vmul.f32 20.0, %v3224_v54  ;;  %v3226_v50 = vld [vmem:[#allocation19_spill] sm:$0xff]  ;;  %v2486_v11 = vmul.f32 20.0, %v3227_v39 }
  0xea   : > { %3219 = vst [vmem:[#allocation13_spill] sm:$0xff] %v2468_v28  ;;  %3221 = vst [vmem:[#allocation14_spill] sm:$0xff] %v2471_v37  ;;  %v2483_v43 = vmul.f32 10.0, %v3226_v50  ;;  %v544_v48 = vsub.f32 %v480_v27, %v512_v59  ;;  %v450_v58 = vadd.f32 %v418_v42, %v330_v52  ;;  %v3229_v51 = vld [vmem:[#allocation20_spill] sm:$0xff]  ;;  %v3230_v44 = vld [vmem:[#allocation21_spill] sm:$0xff]  ;;  %v479_v29 = vadd.f32 525.0, %v447_v38  ;;  %v327_v42 = vpop.xlane.xlu0 %326 }
  0xeb   : > { %3225 = vst [vmem:[#allocation15_spill] sm:$0xff] %v2480_v60  ;;  %3228 = vst [vmem:[#allocation16_spill] sm:$0xff] %v2486_v11  ;;  %v2489_v7 = vmul.f32 10.0, %v3229_v51  ;;  %v2492_v45 = vmul.f32 10.0, %v3230_v44  ;;  %v3231_v10 = vld [vmem:[#allocation22_spill] sm:$0xff]  ;;  %v3232_v54 = vld [vmem:[#allocation23_spill] sm:$0xff]  ;;  %v449_v11 = vadd.f32 %v417_v36, %v327_v42 }
  0xec   : > { %v2495_v4 = vmul.f32 10.0, %v3231_v10  ;;  %v2498_v60 = vmul.f32 10.0, %v3232_v54  ;;  %v3233_v50 = vld [vmem:[#allocation24_spill] sm:$0xff]  ;;  %v2503_v59 = vmax.f32 %v544_v48, 0.0  ;;  %v482_v39 = vadd.f32 525.0, %v450_v58  ;;  %v3234_v27 = vld [vmem:[#allocation25_spill] sm:$0xff] }
  0xed   : > { %v2501_v37 = vmul.f32 10.0, %v3233_v50  ;;  %v2506_v52 = vmul.f32 10.0, %v3234_v27  ;;  %v3235_v51 = vld [vmem:[#allocation26_spill] sm:$0xff]  ;;  %v543_v10 = vsub.f32 %v479_v29, %v2372_v62  ;;  %v336_v38 = vpop.xlane.xlu1 %335  ;;  %v3236_v28 = vld [vmem:[#allocation27_spill] sm:$0xff]  ;;  %v3237_v58 = vld [vmem:[#allocation28_spill] sm:$0xff]  ;;  %v481_v40 = vadd.f32 525.0, %v449_v11 }
  0xee   : > { %v2509_v44 = vmul.f32 10.0, %v3235_v51  ;;  %v2513_v54 = vmul.f32 10.0, %v3236_v28  ;;  %1522 = vrsqrt.f32 %v2503_v59  ;;  %v546_v48 = vsub.f32 %v482_v39, %v2375_v53  ;;  %v3238_v27 = vld [vmem:[#allocation29_spill] sm:$0xff]  ;;  %v3239_v62 = vld [vmem:[#allocation30_spill] sm:$0xff]  ;;  %v3240_v29 = vld [vmem:[#allocation31_spill] sm:$0xff]  ;;  %v333_v53 = vpop.xlane.xlu0 %332 }
  0xef   : > { %v452_v50 = vadd.f32 %v420_v34, %v336_v38  ;;  %v2518_v47 = vmul.f32 10.0, %v3237_v58  ;;  %v2521_v63 = vmul.f32 10.0, %v3238_v27  ;;  %v2523_v51 = vmax.f32 %v543_v10, 0.0  ;;  %v3241_v34 = vld [vmem:[#allocation32_spill] sm:$0xff] }
  0xf0   : > { %v2526_v36 = vmul.f32 10.0, %v3239_v62  ;;  %v2529_v28 = vmul.f32 10.0, %v3240_v29  ;;  %v2531_v42 = vmax.f32 %v546_v48, 0.0  ;;  %v2534_v39 = vmul.f32 10.0, %v3241_v34 }
  0xf1   : > { %v484_v56 = vadd.f32 525.0, %v452_v50  ;;  %1524 = vrsqrt.f32 %v2523_v51  ;;  %v545_v38 = vsub.f32 %v481_v40, %v2378_v35  ;;  %v451_v10 = vadd.f32 %v419_v33, %v333_v53  ;;  %v342_v58 = vpop.xlane.xlu1 %341 }
  0xf2   : > { %v2539_v11 = vmul.f32 10.0, %v2283_v49  ;;  %1526 = vrsqrt.f32 %v2531_v42  ;;  %v454_v48 = vadd.f32 %v422_v19, %v342_v58  ;;  %v2544_v50 = vmul.f32 10.0, %v2285_v15 }
  0xf3   : > { %v548_v27 = vsub.f32 %v484_v56, %v2381_v6  ;;  %v2547_v62 = vmul.f32 10.0, %v2306_v41  ;;  %v2549_v29 = vmax.f32 %v545_v38, 0.0  ;;  %v483_v34 = vadd.f32 525.0, %v451_v10  ;;  %v339_v56 = vpop.xlane.xlu0 %338 }
  0xf4   : > { %v2552_v33 = vmul.f32 10.0, %v2321_v55  ;;  %v2555_v49 = vmul.f32 10.0, %v2345_v61  ;;  %v486_v40 = vadd.f32 525.0, %v454_v48  ;;  %v2560_v19 = vmul.f32 10.0, %v2369_v26 }
  0xf5   : > { %v2557_v35 = vmax.f32 %v548_v27, 0.0  ;;  %1528 = vrsqrt.f32 %v2549_v29  ;;  %v547_v15 = vsub.f32 %v483_v34, %v2384_v18  ;;  %v453_v41 = vadd.f32 %v2459_v22, %v339_v56  ;;  %v348_v6 = vpop.xlane.xlu1 %347 }
  0xf6   : > { %v2566_v55 = vmul.f32 10.0, %v2407_v12  ;;  %v550_v61 = vsub.f32 %v486_v40, %v2387_v3  ;;  %v456_v53 = vadd.f32 %v2465_v57, %v348_v6  ;;  %vm616_vm14 = vcmp.eq.f32.partialorder %v2503_v59, inf }
  0xf7   : > { %1530 = vrsqrt.f32 %v2557_v35  ;;  %v2572_v26 = vmax.f32 %v547_v15, 0.0  ;;  %v485_v38 = vadd.f32 525.0, %v453_v41  ;;  %vm618_vm15 = vcmp.eq.f32.partialorder %v2503_v59, 0.0  ;;  %v345_v10 = vpop.xlane.xlu0 %344 }
  0xf8   : > { %v2575_v18 = vmax.f32 %v550_v61, 0.0  ;;  %v488_v22 = vadd.f32 525.0, %v456_v53  ;;  %v619_v12 = vand.u32 2147483648, %v2503_v59  ;;  %vm609_vm1 = vcmp.eq.f32.partialorder %v2523_v51, inf }
  0xf9   : > { %1532 = vrsqrt.f32 %v2572_v26  ;;  %v549_v57 = vsub.f32 %v485_v38, %v2390_v5  ;;  %v455_v3 = vadd.f32 %v2474_v46, %v345_v10  ;;  %v354_v58 = vpop.xlane.xlu1 %353  ;;  %vm611_vm2 = vcmp.eq.f32.partialorder %v2523_v51, 0.0 }
  0xfa   : > { %v612_v27 = vand.u32 2147483648, %v2523_v51  ;;  %v552_v48 = vsub.f32 %v488_v22, %v2393_v1  ;;  %v458_v34 = vadd.f32 %v2477_v23, %v354_v58  ;;  %vm630_vm3 = vcmp.eq.f32.partialorder %v2531_v42, inf }
  0xfb   : > { %v633_v40 = vand.u32 2147483648, %v2531_v42  ;;  %v626_v56 = vand.u32 2147483648, %v2549_v29  ;;  %v1523_v15 = vpop.eup %1522  ;;  %1534 = vrsqrt.f32 %v2575_v18  ;;  %v2590_v5 = vmax.f32 %v549_v57, 0.0  ;;  %v351_v23 = vpop.xlane.xlu0 %350 }
  0xfc   : > { %v487_v46 = vadd.f32 525.0, %v455_v3  ;;  %vm632_vm4 = vcmp.eq.f32.partialorder %v2531_v42, 0.0  ;;  %v647_v41 = vand.u32 2147483648, %v2557_v35  ;;  %v2594_v6 = vmax.f32 %v552_v48, 0.0 }
  0xfd   : > { %v490_v1 = vadd.f32 525.0, %v458_v34  ;;  %v615_v61 = vmul.f32 %v1523_v15, %v2503_v59  ;;  %v640_v53 = vand.u32 2147483648, %v2572_v26  ;;  %1536 = vrsqrt.f32 %v2590_v5  ;;  %v360_v10 = vpop.xlane.xlu1 %359 }
  0xfe   : > { %v551_v38 = vsub.f32 %v487_v46, %v2396_v2  ;;  %v457_v22 = vadd.f32 %v2483_v43, %v351_v23  ;;  %vm623_vm5 = vcmp.eq.f32.partialorder %v2549_v29, inf  ;;  %v1525_v3 = vpop.eup %1524  ;;  %1538 = vrsqrt.f32 %v2594_v6 }
  0xff   : > { %v554_v58 = vsub.f32 %v490_v1, %v2399_v0  ;;  %v460_v48 = vadd.f32 %v2489_v7, %v360_v10  ;;  %v617_v34 = vsel %vm616_vm14, %v2503_v59, %v615_v61  ;;  %vm625_vm6 = vcmp.eq.f32.partialorder %v2549_v29, 0.0  ;;  %v1527_v2 = vpop.eup %1526  ;;  %v357_v1 = vpop.xlane.xlu0 %356 }
 0x100   : > { %v2610_v43 = vmax.f32 %v551_v38, 0.0  ;;  %v489_v15 = vadd.f32 525.0, %v457_v22  ;;  %v620_v46 = vsel %vm618_vm15, %v619_v12, %v617_v34  ;;  %v608_v23 = vmul.f32 %v1525_v3, %v2523_v51 }
 0x101   : > { %v2615_v57 = vmax.f32 %v554_v58, 0.0  ;;  %v492_v0 = vadd.f32 525.0, %v460_v48  ;;  %v834_v7 = vsel %vm190_vm0, %v620_v46, 0.0  ;;  %v629_v10 = vmul.f32 %v1527_v2, %v2531_v42  ;;  %v366_v59 = vpop.xlane.xlu1 %365 }
 0x102   : > { %vm644_vm7 = vcmp.eq.f32.partialorder %v2557_v35, inf  ;;  %1540 = vrsqrt.f32 %v2610_v43  ;;  %v553_v61 = vsub.f32 %v489_v15, %v2402_v8  ;;  %v459_v38 = vadd.f32 %v2492_v45, %v357_v1  ;;  %835 = vadd.xlane.f32.xlu1 %v834_v7  ;;  %v1529_v22 = vpop.eup %1528 }
 0x103   : > { %v610_v12 = vsel %vm609_vm1, %v2523_v51, %v608_v23  ;;  %vm646_vm8 = vcmp.eq.f32.partialorder %v2557_v35, 0.0  ;;  %1542 = vrsqrt.f32 %v2615_v57  ;;  %v556_v3 = vsub.f32 %v492_v0, %v2405_v9  ;;  %v363_v51 = vpop.xlane.xlu0 %362 }
 0x104   : > { %v462_v58 = vadd.f32 %v2495_v4, %v366_v59  ;;  %v613_v8 = vsel %vm611_vm2, %v612_v27, %v610_v12  ;;  %vm637_vm9 = vcmp.eq.f32.partialorder %v2572_v26, inf  ;;  %v2633_v45 = vmax.f32 %v553_v61, 0.0  ;;  %v1531_v15 = vpop.eup %1530 }
 0x105   : > { %v491_v48 = vadd.f32 525.0, %v459_v38  ;;  %v831_v34 = vsel %vm190_vm0, %v613_v8, 0.0  ;;  %v631_v2 = vsel %vm630_vm3, %v2531_v42, %v629_v10  ;;  %vm639_vm10 = vcmp.eq.f32.partialorder %v2572_v26, 0.0  ;;  %v372_v1 = vpop.xlane.xlu1 %371 }
 0x106   : > { %v2640_v9 = vmax.f32 %v556_v3, 0.0  ;;  %v494_v4 = vadd.f32 525.0, %v462_v58  ;;  %832 = vadd.xlane.f32.xlu0 %v831_v34  ;;  %v634_v27 = vsel %vm632_vm4, %v633_v40, %v631_v2  ;;  %v622_v46 = vmul.f32 %v1529_v22, %v2549_v29  ;;  %v1533_v10 = vpop.eup %1532 }
 0x107   : > { %1544 = vrsqrt.f32 %v2633_v45  ;;  %v555_v23 = vsub.f32 %v491_v48, %v2410_v13  ;;  %v461_v0 = vadd.f32 %v2498_v60, %v363_v51  ;;  %v840_v7 = vsel %vm190_vm0, %v634_v27, 0.0  ;;  %v369_v3 = vpop.xlane.xlu0 %368 }
 0x108   : > { %vm658_vm11 = vcmp.eq.f32.partialorder %v2575_v18, inf  ;;  %1546 = vrsqrt.f32 %v2640_v9  ;;  %v558_v61 = vsub.f32 %v494_v4, %v2413_v16  ;;  %v464_v42 = vadd.f32 %v2501_v37, %v372_v1  ;;  %841 = vadd.xlane.f32.xlu1 %v840_v7  ;;  %v1535_v16 = vpop.eup %1534 }
 0x109   : > { %v624_v40 = vsel %vm623_vm5, %v2549_v29, %v622_v46  ;;  %vm660_vm12 = vcmp.eq.f32.partialorder %v2575_v18, 0.0  ;;  %v2657_v60 = vmax.f32 %v555_v23, 0.0  ;;  %v493_v13 = vadd.f32 525.0, %v461_v0  ;;  %v378_v29 = vpop.xlane.xlu1 %377 }
 0x10a   : > { %v627_v38 = vsel %vm625_vm6, %v626_v56, %v624_v40  ;;  %v643_v59 = vmul.f32 %v1531_v15, %v2557_v35  ;;  %v2664_v12 = vmax.f32 %v558_v61, 0.0  ;;  %v496_v37 = vadd.f32 525.0, %v464_v42  ;;  %v1537_v34 = vpop.eup %1536 }
 0x10b   : > { %v837_v22 = vsel %vm190_vm0, %v627_v38, 0.0  ;;  %v636_v58 = vmul.f32 %v1533_v10, %v2572_v26  ;;  %1548 = vrsqrt.f32 %v2657_v60  ;;  %v557_v8 = vsub.f32 %v493_v13, %v2416_v17  ;;  %v1539_v4 = vpop.eup %1538 }
 0x10c   : > { %838 = vadd.xlane.f32.xlu0 %v837_v22  ;;  %v463_v48 = vadd.f32 %v2506_v52, %v369_v3  ;;  %v645_v56 = vsel %vm644_vm7, %v2557_v35, %v643_v59  ;;  %1550 = vrsqrt.f32 %v2664_v12  ;;  %v560_v2 = vsub.f32 %v496_v37, %v2419_v20  ;;  %v375_v35 = vpop.xlane.xlu0 %374 }
 0x10d   : > { %v466_v15 = vadd.f32 %v2509_v44, %v378_v29  ;;  %v648_v17 = vsel %vm646_vm8, %v647_v41, %v645_v56  ;;  %v2681_v51 = vmax.f32 %v557_v8, 0.0  ;;  %v638_v46 = vsel %vm637_vm9, %v2572_v26, %v636_v58  ;;  %v384_v10 = vpop.xlane.xlu1 %383 }
 0x10e   : > { %v495_v52 = vadd.f32 525.0, %v463_v48  ;;  %v846_v27 = vsel %vm190_vm0, %v648_v17, 0.0  ;;  %v2687_v23 = vmax.f32 %v560_v2, 0.0  ;;  %v641_v44 = vsel %vm639_vm10, %v640_v53, %v638_v46 }
 0x10f   : > { %v498_v20 = vadd.f32 525.0, %v466_v15  ;;  %847 = vadd.xlane.f32.xlu1 %v846_v27  ;;  %v657_v41 = vmul.f32 %v1535_v16, %v2575_v18  ;;  %1552 = vrsqrt.f32 %v2681_v51  ;;  %v843_v1 = vsel %vm190_vm0, %v641_v44, 0.0  ;;  %v1541_v61 = vpop.eup %1540 }
 0x110   : > { %v559_v0 = vsub.f32 %v495_v52, %v2422_v21  ;;  %v465_v7 = vadd.f32 %v2513_v54, %v375_v35  ;;  %1554 = vrsqrt.f32 %v2687_v23  ;;  %844 = vadd.xlane.f32.xlu0 %v843_v1  ;;  %v468_v26 = vadd.f32 %v2518_v47, %v384_v10  ;;  %v1543_v40 = vpop.eup %1542  ;;  %v381_v37 = vpop.xlane.xlu0 %380 }
 0x111   : > { %v562_v42 = vsub.f32 %v498_v20, %v2425_v24  ;;  %v659_v53 = vsel %vm658_vm11, %v2575_v18, %v657_v41  ;;  %v3242_v38 = vand.u32 2147483648, %v2575_v18  ;;  %v650_v59 = vmul.f32 %v1537_v34, %v2590_v5  ;;  %v390_v18 = vpop.xlane.xlu1 %389 }
 0x112   : > { %v2704_v13 = vmax.f32 %v559_v0, 0.0  ;;  %v497_v21 = vadd.f32 525.0, %v465_v7  ;;  %v500_v24 = vadd.f32 525.0, %v468_v26  ;;  %vm651_vm13 = vcmp.eq.f32.partialorder %v2590_v5, inf }
 0x113   : > { %v662_v54 = vsel %vm660_vm12, %v3242_v38, %v659_v53  ;;  %v2711_v16 = vmax.f32 %v562_v42, 0.0  ;;  %v652_v3 = vsel %vm651_vm13, %v2590_v5, %v650_v59  ;;  %vm653_vm14 = vcmp.eq.f32.partialorder %v2590_v5, 0.0 }
 0x114   : > { %v852_v47 = vsel %vm190_vm0, %v662_v54, 0.0  ;;  %1556 = vrsqrt.f32 %v2704_v13  ;;  %v561_v22 = vsub.f32 %v497_v21, %v2428_v14  ;;  %v1545_v58 = vpop.eup %1544  ;;  %v564_v8 = vsub.f32 %v500_v24, %v2431_v25  ;;  %v387_v27 = vpop.xlane.xlu0 %386 }
 0x115   : > { %853 = vadd.xlane.f32.xlu1 %v852_v47  ;;  %1558 = vrsqrt.f32 %v2711_v16  ;;  %v654_v48 = vand.u32 2147483648, %v2590_v5  ;;  %v467_v29 = vadd.f32 %v2521_v63, %v381_v37  ;;  %v2723_v56 = vpop.eup %1546  ;;  %v470_v14 = vadd.f32 %v2526_v36, %v390_v18  ;;  %v396_v44 = vpop.xlane.xlu1 %395  ;;  %v3243_v37 = vld [vmem:[#allocation10_spill] sm:$0xff] }
 0x116   : > { %v2725_v34 = vmax.f32 %v561_v22, 0.0  ;;  %v671_v2 = vmul.f32 %v1539_v4, %v2594_v6  ;;  %vm672_vm15 = vcmp.eq.f32.partialorder %v2594_v6, inf  ;;  %v2730_v15 = vmax.f32 %v564_v8, 0.0 }
 0x117   : > { %v655_v17 = vsel %vm653_vm14, %v654_v48, %v652_v3  ;;  %v499_v52 = vadd.f32 525.0, %v467_v29  ;;  %vm674_vm1 = vcmp.eq.f32.partialorder %v2594_v6, 0.0  ;;  %v502_v25 = vadd.f32 525.0, %v470_v14 }
 0x118   : > { %1560 = vrsqrt.f32 %v2725_v34  ;;  %v849_v63 = vsel %vm190_vm0, %v655_v17, 0.0  ;;  %v673_v5 = vsel %vm672_vm15, %v2594_v6, %v671_v2  ;;  %v2736_v46 = vpop.eup %1548  ;;  %v675_v4 = vand.u32 2147483648, %v2594_v6 }
 0x119   : > { %1562 = vrsqrt.f32 %v2730_v15  ;;  %850 = vadd.xlane.f32.xlu0 %v849_v63  ;;  %v563_v36 = vsub.f32 %v499_v52, %v2435_v30  ;;  %v664_v20 = vmul.f32 %v1541_v61, %v2610_v43  ;;  %v2742_v35 = vpop.eup %1550  ;;  %v566_v41 = vsub.f32 %v502_v25, %v2438_v31 }
 0x11a   : > { %vm665_vm2 = vcmp.eq.f32.partialorder %v2610_v43, inf  ;;  %vm667_vm3 = vcmp.eq.f32.partialorder %v2610_v43, 0.0  ;;  %v668_v0 = vand.u32 2147483648, %v2610_v43  ;;  %v676_v30 = vsel %vm674_vm1, %v675_v4, %v673_v5 }
 0x11b   : > { %v2748_v1 = vmax.f32 %v563_v36, 0.0  ;;  %v666_v7 = vsel %vm665_vm2, %v2610_v43, %v664_v20  ;;  %v469_v10 = vadd.f32 %v2529_v28, %v387_v27  ;;  %v2754_v61 = vmax.f32 %v566_v41, 0.0  ;;  %v3245_v41 = vld [vmem:[#allocation11_spill] sm:$0xff] }
 0x11c   : > { %v858_v42 = vsel %vm190_vm0, %v676_v30, 0.0  ;;  %v669_v31 = vsel %vm667_vm3, %v668_v0, %v666_v7  ;;  %v472_v26 = vadd.f32 %v2534_v39, %v396_v44  ;;  %v2758_v53 = vpop.eup %1552  ;;  %v685_v38 = vmul.f32 %v1543_v40, %v2615_v57  ;;  %v393_v39 = vpop.xlane.xlu0 %392 }
 0x11d   : > { %1564 = vrsqrt.f32 %v2748_v1  ;;  %859 = vadd.xlane.f32.xlu1 %v858_v42  ;;  %v855_v21 = vsel %vm190_vm0, %v669_v31, 0.0  ;;  %v501_v6 = vadd.f32 525.0, %v469_v10  ;;  %v2763_v43 = vpop.eup %1554  ;;  %vm686_vm4 = vcmp.eq.f32.partialorder %v2615_v57, inf  ;;  %v402_v40 = vpop.xlane.xlu1 %401 }
 0x11e   : > { %1566 = vrsqrt.f32 %v2754_v61  ;;  %856 = vadd.xlane.f32.xlu0 %v855_v21  ;;  %v504_v28 = vadd.f32 525.0, %v472_v26  ;;  %vm688_vm5 = vcmp.eq.f32.partialorder %v2615_v57, 0.0  ;;  %v687_v59 = vsel %vm686_vm4, %v2615_v57, %v685_v38 }
 0x11f   : > { %v565_v54 = vsub.f32 %v501_v6, %v2441_v32  ;;  %v689_v24 = vand.u32 2147483648, %v2615_v57  ;;  %v678_v47 = vmul.f32 %v1545_v58, %v2633_v45  ;;  %vm679_vm6 = vcmp.eq.f32.partialorder %v2633_v45, inf }
 0x120   : > { %v568_v22 = vsub.f32 %v504_v28, %v3243_v37  ;;  %vm681_vm7 = vcmp.eq.f32.partialorder %v2633_v45, 0.0  ;;  %v682_v3 = vand.u32 2147483648, %v2633_v45  ;;  %v471_v57 = vadd.f32 %v2539_v11, %v393_v39  ;;  %v399_v25 = vpop.xlane.xlu0 %398  ;;  %v3247_v37 = vld [vmem:[#allocation13_spill] sm:$0xff] }
 0x121   : > { %v2776_v18 = vpop.eup %1556  ;;  %v2778_v8 = vmax.f32 %v565_v54, 0.0  ;;  %v690_v32 = vsel %vm688_vm5, %v689_v24, %v687_v59  ;;  %v680_v48 = vsel %vm679_vm6, %v2633_v45, %v678_v47  ;;  %v474_v17 = vadd.f32 %v2544_v50, %v402_v40  ;;  %v3244_v50 = vld [vmem:[#allocation53_spill] sm:$0xff]  ;;  %v408_v20 = vpop.xlane.xlu1 %407  ;;  %v3246_v54 = vld [vmem:[#allocation12_spill] sm:$0xff] }
 0x122   : > { %v2782_v29 = vpop.eup %1558  ;;  %v2784_v58 = vmax.f32 %v568_v22, 0.0  ;;  %v864_v14 = vsel %vm190_vm0, %v690_v32, 0.0  ;;  %v683_v2 = vsel %vm681_vm7, %v682_v3, %v680_v48  ;;  %v503_v63 = vadd.f32 525.0, %v471_v57 }
 0x123   : > { %1568 = vrsqrt.f32 %v2778_v8  ;;  %865 = vadd.xlane.f32.xlu1 %v864_v14  ;;  %v861_v52 = vsel %vm190_vm0, %v683_v2, 0.0  ;;  %v699_v45 = vmul.f32 %v2723_v56, %v2640_v9  ;;  %v506_v11 = vadd.f32 525.0, %v474_v17 }
 0x124   : > { %1570 = vrsqrt.f32 %v2784_v58  ;;  %862 = vadd.xlane.f32.xlu0 %v861_v52  ;;  %vm700_vm8 = vcmp.eq.f32.partialorder %v2640_v9, inf  ;;  %vm702_vm9 = vcmp.eq.f32.partialorder %v2640_v9, 0.0  ;;  %v567_v27 = vsub.f32 %v503_v63, %v3244_v50 }
 0x125   : > { %v2795_v5 = vpop.eup %1560  ;;  %v701_v36 = vsel %vm700_vm8, %v2640_v9, %v699_v45  ;;  %v703_v4 = vand.u32 2147483648, %v2640_v9  ;;  %v692_v56 = vmul.f32 %v2736_v46, %v2657_v60  ;;  %v570_v0 = vsub.f32 %v506_v11, %v3245_v41  ;;  %v414_v40 = vpop.xlane.xlu1 %413 }
 0x126   : > { %v2802_v44 = vpop.eup %1562  ;;  %vm693_vm10 = vcmp.eq.f32.partialorder %v2657_v60, inf  ;;  %vm695_vm11 = vcmp.eq.f32.partialorder %v2657_v60, 0.0  ;;  %v696_v30 = vand.u32 2147483648, %v2657_v60  ;;  %v2808_v7 = vmax.f32 %v567_v27, 0.0 }
 0x127   : > { %v704_v10 = vsel %vm702_vm9, %v703_v4, %v701_v36  ;;  %v694_v42 = vsel %vm693_vm10, %v2657_v60, %v692_v56  ;;  %v473_v9 = vadd.f32 %v2547_v62, %v399_v25  ;;  %v2812_v31 = vmax.f32 %v570_v0, 0.0  ;;  %v3248_v25 = vld [vmem:[#allocation14_spill] sm:$0xff]  ;;  %v3249_v4 = vld [vmem:[#allocation15_spill] sm:$0xff] }
 0x128   : > { %v870_v46 = vsel %vm190_vm0, %v704_v10, 0.0  ;;  %v697_v26 = vsel %vm695_vm11, %v696_v30, %v694_v42  ;;  %v476_v21 = vadd.f32 %v2552_v33, %v408_v20  ;;  %1572 = vrsqrt.f32 %v2808_v7  ;;  %v405_v33 = vpop.xlane.xlu0 %404 }
 0x129   : > { %871 = vadd.xlane.f32.xlu1 %v870_v46  ;;  %v867_v6 = vsel %vm190_vm0, %v697_v26, 0.0  ;;  %v505_v38 = vadd.f32 525.0, %v473_v9  ;;  %v713_v28 = vmul.f32 %v2742_v35, %v2664_v12  ;;  %1574 = vrsqrt.f32 %v2812_v31 }
 0x12a   : > { %v2820_v39 = vpop.eup %1564  ;;  %868 = vadd.xlane.f32.xlu0 %v867_v6  ;;  %v508_v62 = vadd.f32 525.0, %v476_v21  ;;  %vm714_vm12 = vcmp.eq.f32.partialorder %v2664_v12, inf  ;;  %vm716_vm13 = vcmp.eq.f32.partialorder %v2664_v12, 0.0  ;;  %v717_v47 = vand.u32 2147483648, %v2664_v12  ;;  %v3251_v6 = vld [vmem:[#allocation9_spill] sm:$0xff] }
 0x12b   : > { %v2825_v60 = vpop.eup %1566  ;;  %v569_v59 = vsub.f32 %v505_v38, %v3246_v54  ;;  %v715_v24 = vsel %vm714_vm12, %v2664_v12, %v713_v28  ;;  %v706_v35 = vmul.f32 %v2758_v53, %v2681_v51  ;;  %vm707_vm14 = vcmp.eq.f32.partialorder %v2681_v51, inf }
 0x12c   : > { %v572_v22 = vsub.f32 %v508_v62, %v3247_v37  ;;  %vm709_vm15 = vcmp.eq.f32.partialorder %v2681_v51, 0.0  ;;  %v710_v3 = vand.u32 2147483648, %v2681_v51  ;;  %v718_v48 = vsel %vm716_vm13, %v717_v47, %v715_v24  ;;  %v3252_v62 = vld [vmem:[#allocation16_spill] sm:$0xff] }
 0x12d   : > { %v2836_v32 = vmax.f32 %v569_v59, 0.0  ;;  %v708_v57 = vsel %vm707_vm14, %v2681_v51, %v706_v35  ;;  %v475_v14 = vadd.f32 %v2555_v49, %v405_v33  ;;  %v876_v53 = vsel %vm190_vm0, %v718_v48, 0.0 }
 0x12e   : > { %v2840_v12 = vmax.f32 %v572_v22, 0.0  ;;  %v711_v2 = vsel %vm709_vm15, %v710_v3, %v708_v57  ;;  %v478_v17 = vadd.f32 %v2560_v19, %v414_v40  ;;  %877 = vadd.xlane.f32.xlu1 %v876_v53  ;;  %v727_v45 = vmul.f32 %v2763_v43, %v2687_v23  ;;  %v411_v19 = vpop.xlane.xlu0 %410 }
 0x12f   : > { %1576 = vrsqrt.f32 %v2836_v32  ;;  %v873_v52 = vsel %vm190_vm0, %v711_v2, 0.0  ;;  %v507_v63 = vadd.f32 525.0, %v475_v14  ;;  %vm728_vm1 = vcmp.eq.f32.partialorder %v2687_v23, inf }
 0x130   : > { %v2848_v11 = vpop.eup %1568  ;;  %1578 = vrsqrt.f32 %v2840_v12  ;;  %874 = vadd.xlane.f32.xlu0 %v873_v52  ;;  %v510_v49 = vadd.f32 525.0, %v478_v17  ;;  %vm730_vm2 = vcmp.eq.f32.partialorder %v2687_v23, 0.0  ;;  %v729_v27 = vsel %vm728_vm1, %v2687_v23, %v727_v45 }
 0x131   : > { %v2853_v51 = vpop.eup %1570  ;;  %v571_v50 = vsub.f32 %v507_v63, %v3248_v25  ;;  %v731_v36 = vand.u32 2147483648, %v2687_v23  ;;  %v720_v43 = vmul.f32 %v2776_v18, %v2704_v13  ;;  %vm721_vm3 = vcmp.eq.f32.partialorder %v2704_v13, inf }
 0x132   : > { %v574_v56 = vsub.f32 %v510_v49, %v3249_v4  ;;  %vm723_vm4 = vcmp.eq.f32.partialorder %v2704_v13, 0.0  ;;  %v724_v20 = vand.u32 2147483648, %v2704_v13  ;;  %v477_v10 = vadd.f32 %v2566_v55, %v411_v19 }
 0x133   : > { %v2864_v41 = vmax.f32 %v571_v50, 0.0  ;;  %v732_v0 = vsel %vm730_vm2, %v731_v36, %v729_v27  ;;  %v722_v30 = vsel %vm721_vm3, %v2704_v13, %v720_v43  ;;  %v741_v9 = vmul.f32 %v2782_v29, %v2711_v16  ;;  %v3250_v13 = vld [vmem:[#allocation52_spill] sm:$0xff] }
 0x134   : > { %v2868_v42 = vmax.f32 %v574_v56, 0.0  ;;  %v882_v23 = vsel %vm190_vm0, %v732_v0, 0.0  ;;  %v725_v18 = vsel %vm723_vm4, %v724_v20, %v722_v30  ;;  %v509_v26 = vadd.f32 525.0, %v477_v10  ;;  %v3253_v0 = vld [vmem:[#allocation41_spill] sm:$0xff] }
 0x135   : > { %1580 = vrsqrt.f32 %v2864_v41  ;;  %883 = vadd.xlane.f32.xlu1 %v882_v23  ;;  %v879_v46 = vsel %vm190_vm0, %v725_v18, 0.0  ;;  %vm742_vm5 = vcmp.eq.f32.partialorder %v2711_v16, inf  ;;  %v1573_v21 = vpop.eup %1572  ;;  %v2878_v55 = vadd.s32 %v3251_v6, %v3250_v13  ;;  %v3254_v10 = vld [vmem:[#allocation49_spill] sm:$0xff]  ;;  %v3255_v23 = vld [vmem:[#allocation51_spill] sm:$0xff] }
 0x136   : > { %1582 = vrsqrt.f32 %v2868_v42  ;;  %880 = vadd.xlane.f32.xlu0 %v879_v46  ;;  %v743_v38 = vsel %vm742_vm5, %v2711_v16, %v741_v9  ;;  %v745_v29 = vand.u32 2147483648, %v2711_v16  ;;  %v1575_v28 = vpop.eup %1574  ;;  %v573_v33 = vsub.f32 %v509_v26, %v3252_v62 }
 0x137   : > { %vm744_vm6 = vcmp.eq.f32.partialorder %v2711_v16, 0.0  ;;  %v734_v54 = vmul.f32 %v2795_v5, %v2725_v34  ;;  %vm735_vm7 = vcmp.eq.f32.partialorder %v2725_v34, inf  ;;  %vm737_vm8 = vcmp.eq.f32.partialorder %v2725_v34, 0.0 }
 0x138   : > { %v746_v59 = vsel %vm744_vm6, %v745_v29, %v743_v38  ;;  %v738_v24 = vand.u32 2147483648, %v2725_v34  ;;  %v755_v47 = vmul.f32 %v2802_v44, %v2730_v15  ;;  %v2892_v35 = vmax.f32 %v573_v33, 0.0 }
 0x139   : > { %v888_v40 = vsel %vm190_vm0, %v746_v59, 0.0  ;;  %v736_v37 = vsel %vm735_vm7, %v2725_v34, %v734_v54  ;;  %vm756_vm9 = vcmp.eq.f32.partialorder %v2730_v15, inf  ;;  %v759_v22 = vand.u32 2147483648, %v2730_v15 }
 0x13a   : > { %889 = vadd.xlane.f32.xlu1 %v888_v40  ;;  %v739_v16 = vsel %vm737_vm8, %v738_v24, %v736_v37  ;;  %v757_v5 = vsel %vm756_vm9, %v2730_v15, %v755_v47  ;;  %v748_v3 = vmul.f32 %v2820_v39, %v2748_v1  ;;  %1584 = vrsqrt.f32 %v2892_v35 }
 0x13b   : > { %v885_v44 = vsel %vm190_vm0, %v739_v16, 0.0  ;;  %vm758_vm10 = vcmp.eq.f32.partialorder %v2730_v15, 0.0  ;;  %vm749_vm11 = vcmp.eq.f32.partialorder %v2748_v1, inf  ;;  %v752_v14 = vand.u32 2147483648, %v2748_v1 }
 0x13c   : > { %v1577_v34 = vpop.eup %1576  ;;  %886 = vadd.xlane.f32.xlu0 %v885_v44  ;;  %v760_v48 = vsel %vm758_vm10, %v759_v22, %v757_v5  ;;  %v750_v57 = vsel %vm749_vm11, %v2748_v1, %v748_v3  ;;  %v769_v53 = vmul.f32 %v2825_v60, %v2754_v61  ;;  %vm751_vm12 = vcmp.eq.f32.partialorder %v2748_v1, 0.0  ;;  %v3256_v44 = vld [vmem:[#allocation47_spill] sm:$0xff] }
 0x13d   : > { %v1579_v2 = vpop.eup %1578  ;;  %v894_v39 = vsel %vm190_vm0, %v760_v48, 0.0  ;;  %vm770_vm13 = vcmp.eq.f32.partialorder %v2754_v61, inf  ;;  %v773_v15 = vand.u32 2147483648, %v2754_v61  ;;  %v753_v17 = vsel %vm751_vm12, %v752_v14, %v750_v57  ;;  %v3257_v48 = vld [vmem:[#allocation48_spill] sm:$0xff]  ;;  %v1586_v14 = vld [vmem:[%s1729_s26 + $0xe8] sm:$0xff] }
 0x13e   : > { %895 = vadd.xlane.f32.xlu1 %v894_v39  ;;  %v771_v52 = vsel %vm770_vm13, %v2754_v61, %v769_v53  ;;  %vm772_vm14 = vcmp.eq.f32.partialorder %v2754_v61, 0.0  ;;  %v762_v63 = vmul.f32 %v2848_v11, %v2778_v8  ;;  %v891_v60 = vsel %vm190_vm0, %v753_v17, 0.0  ;;  %v1587_v17 = vld [vmem:[%s1729_s26 + $0xe0] sm:$0xff] }
 0x13f   : > { %v774_v45 = vsel %vm772_vm14, %v773_v15, %v771_v52  ;;  %vm763_vm15 = vcmp.eq.f32.partialorder %v2778_v8, inf  ;;  %v766_v1 = vand.u32 2147483648, %v2778_v8  ;;  %vm765_vm1 = vcmp.eq.f32.partialorder %v2778_v8, 0.0 }
 0x140   : > { %892 = vadd.xlane.f32.xlu0 %v891_v60  ;;  %v900_v49 = vsel %vm190_vm0, %v774_v45, 0.0  ;;  %v764_v19 = vsel %vm763_vm15, %v2778_v8, %v762_v63  ;;  %v783_v61 = vmul.f32 %v2853_v51, %v2784_v58  ;;  %vm784_vm2 = vcmp.eq.f32.partialorder %v2784_v58, inf  ;;  %v1588_v63 = vld [vmem:[%s1729_s26 + $0xf8] sm:$0xff] }
 0x141   : > { %v767_v25 = vsel %vm765_vm1, %v766_v1, %v764_v19  ;;  %v787_v11 = vand.u32 2147483648, %v2784_v58  ;;  %v776_v50 = vmul.f32 %v1573_v21, %v2808_v7  ;;  %vm786_vm3 = vcmp.eq.f32.partialorder %v2784_v58, 0.0  ;;  %v1589_v1 = vld [vmem:[%s1729_s26 + $0xf0] sm:$0xff] }
 0x142   : > { %v1581_v27 = vpop.eup %1580  ;;  %901 = vadd.xlane.f32.xlu1 %v900_v49  ;;  %v897_v36 = vsel %vm190_vm0, %v767_v25, 0.0  ;;  %v785_v43 = vsel %vm784_vm2, %v2784_v58, %v783_v61  ;;  %vm777_vm4 = vcmp.eq.f32.partialorder %v2808_v7, inf  ;;  %v780_v56 = vand.u32 2147483648, %v2808_v7  ;;  %v3258_v25 = vld [vmem:[#allocation46_spill] sm:$0xff] }
 0x143   : > { %v1583_v8 = vpop.eup %1582  ;;  %v788_v4 = vsel %vm786_vm3, %v787_v11, %v785_v43  ;;  %v778_v51 = vsel %vm777_vm4, %v2808_v7, %v776_v50  ;;  %v797_v20 = vmul.f32 %v1575_v28, %v2812_v31  ;;  %vm1089_vm5 = vcmp.lt.s32.totalorder %v3253_v0, 300  ;;  %v3259_v11 = vld [vmem:[#allocation33_spill] sm:$0xff]  ;;  %v3262_v43 = vld [vmem:[#allocation50_spill] sm:$0xff]  ;;  %v3267_v0 = vld [vmem:[#allocation39_spill] sm:$0xff] }
 0x144   : > { %898 = vadd.xlane.f32.xlu0 %v897_v36  ;;  %v906_v30 = vsel %vm190_vm0, %v788_v4, 0.0  ;;  %vm779_vm6 = vcmp.eq.f32.partialorder %v2808_v7, 0.0  ;;  %vm798_vm7 = vcmp.eq.f32.partialorder %v2812_v31, inf  ;;  %v801_v58 = vand.u32 2147483648, %v2812_v31  ;;  %v3260_v50 = vld [vmem:[#allocation37_spill] sm:$0xff]  ;;  %v3264_v4 = vld [vmem:[#allocation38_spill] sm:$0xff] }
 0x145   : > { %vm1088_vm8 = vcmp.lt.s32.totalorder %v3254_v10, 300  ;;  %vm1091_vm9 = vcmp.lt.s32.totalorder %v3255_v23, 300  ;;  %v781_v18 = vsel %vm779_vm6, %v780_v56, %v778_v51  ;;  %v799_v9 = vsel %vm798_vm7, %v2812_v31, %v797_v20  ;;  %v3266_v20 = vld [vmem:[#allocation35_spill] sm:$0xff]  ;;  %v3269_v10 = vld [vmem:[#allocation36_spill] sm:$0xff] }
 0x146   : > { %vm800_vm10 = vcmp.eq.f32.partialorder %v2812_v31, 0.0  ;;  %v790_v46 = vmul.f32 %v1577_v34, %v2836_v32  ;;  %907 = vadd.xlane.f32.xlu1 %v906_v30  ;;  %v903_v26 = vsel %vm190_vm0, %v781_v18, 0.0  ;;  %vm791_vm11 = vcmp.eq.f32.partialorder %v2836_v32, inf  ;;  %v3270_v23 = vld [vmem:[#allocation40_spill] sm:$0xff] }
 0x147   : > { %v802_v21 = vsel %vm800_vm10, %v801_v58, %v799_v9  ;;  %v794_v7 = vand.u32 2147483648, %v2836_v32  ;;  %vm793_vm12 = vcmp.eq.f32.partialorder %v2836_v32, 0.0  ;;  %v811_v38 = vmul.f32 %v1579_v2, %v2840_v12  ;;  %v1585_v29 = vpop.eup %1584 }
 0x148   : > { %v912_v13 = vsel %vm190_vm0, %v802_v21, 0.0  ;;  %v792_v6 = vsel %vm791_vm11, %v2836_v32, %v790_v46  ;;  %904 = vadd.xlane.f32.xlu0 %v903_v26  ;;  %vm812_vm13 = vcmp.eq.f32.partialorder %v2840_v12, inf  ;;  %v815_v28 = vand.u32 2147483648, %v2840_v12 }
 0x149   : > { %v795_v31 = vsel %vm793_vm12, %v794_v7, %v792_v6  ;;  %v804_v62 = vmul.f32 %v1581_v27, %v2864_v41  ;;  %v813_v54 = vsel %vm812_vm13, %v2840_v12, %v811_v38  ;;  %vm814_vm14 = vcmp.eq.f32.partialorder %v2840_v12, 0.0 }
 0x14a   : > { %v909_v33 = vsel %vm190_vm0, %v795_v31, 0.0  ;;  %vm805_vm15 = vcmp.eq.f32.partialorder %v2864_v41, inf  ;;  %913 = vadd.xlane.f32.xlu1 %v912_v13  ;;  %v816_v32 = vsel %vm814_vm14, %v815_v28, %v813_v54  ;;  %v808_v24 = vand.u32 2147483648, %v2864_v41  ;;  %v3273_v28 = vld [vmem:[#allocation43_spill] sm:$0xff] }
 0x14b   : > { %v806_v59 = vsel %vm805_vm15, %v2864_v41, %v804_v62  ;;  %v825_v47 = vmul.f32 %v1583_v8, %v2868_v42  ;;  %v918_v40 = vsel %vm190_vm0, %v816_v32, 0.0  ;;  %vm807_vm1 = vcmp.eq.f32.partialorder %v2864_v41, 0.0  ;;  %v3263_v8 = vld [vmem:[#allocation34_spill] sm:$0xff]  ;;  %v3275_v32 = vld [vmem:[#allocation45_spill] sm:$0xff] }
 0x14c   : > { %vm826_vm2 = vcmp.eq.f32.partialorder %v2868_v42, inf  ;;  %v829_v37 = vand.u32 2147483648, %v2868_v42  ;;  %910 = vadd.xlane.f32.xlu0 %v909_v33  ;;  %v809_v12 = vsel %vm807_vm1, %v808_v24, %v806_v59  ;;  %vm828_vm3 = vcmp.eq.f32.partialorder %v2868_v42, 0.0  ;;  %v3274_v33 = vld [vmem:[#allocation44_spill] sm:$0xff] }
 0x14d   : > { %v827_v16 = vsel %vm826_vm2, %v2868_v42, %v825_v47  ;;  %v818_v5 = vmul.f32 %v1585_v29, %v2892_v35  ;;  %v915_v22 = vsel %vm190_vm0, %v809_v12, 0.0  ;;  %vm819_vm4 = vcmp.eq.f32.partialorder %v2892_v35, inf  ;;  %v3272_v29 = vld [vmem:[#allocation42_spill] sm:$0xff] }
 0x14e   : > { %v830_v3 = vsel %vm828_vm3, %v829_v37, %v827_v16  ;;  %v822_v41 = vand.u32 2147483648, %v2892_v35  ;;  %v1236_v34 = vsel %vm190_vm0, %v3256_v44, inf  ;;  %vm1090_vm6 = vcmp.lt.s32.totalorder %v2878_v55, 300  ;;  %919 = vadd.xlane.f32.xlu1 %v918_v40 }
 0x14f   : > { %v820_v42 = vsel %vm819_vm4, %v2892_v35, %v818_v5  ;;  %vm821_vm7 = vcmp.eq.f32.partialorder %v2892_v35, 0.0  ;;  %v1337_v57 = vsel %vm190_vm0, %v3257_v48, -inf  ;;  %v1185_v53 = vsel %vm1089_vm5, %v1586_v14, inf }
 0x150   : > { %v924_v2 = vsel %vm190_vm0, %v830_v3, 0.0  ;;  %v823_v39 = vsel %vm821_vm7, %v822_v41, %v820_v42  ;;  %v1286_v15 = vsel %vm1089_vm5, %v1586_v14, -inf  ;;  %v1184_v52 = vsel %vm1088_vm8, %v1587_v17, inf  ;;  %916 = vadd.xlane.f32.xlu0 %v915_v22 }
 0x151   : > { %v1285_v35 = vsel %vm1088_vm8, %v1587_v17, -inf  ;;  %v1187_v60 = vsel %vm1091_vm9, %v1588_v63, inf  ;;  %v1288_v45 = vsel %vm1091_vm9, %v1588_v63, -inf  ;;  %v1186_v49 = vsel %vm1090_vm6, %v1589_v1, inf }
 0x152   : > { %v1287_v19 = vsel %vm1090_vm6, %v1589_v1, -inf  ;;  %v921_v61 = vsel %vm190_vm0, %v823_v39, 0.0  ;;  %v3261_v27 = vmin.f32 %v3259_v11, %v3260_v50  ;;  %v3265_v51 = vmax.f32 %v3263_v8, %v3264_v4  ;;  %925 = vadd.xlane.f32.xlu1 %v924_v2 }
 0x153   : > { %v3268_v30 = vmin.f32 %v3266_v20, %v3267_v0  ;;  %v3271_v55 = vmax.f32 %v3269_v10, %v3270_v23  ;;  %v1242_v9 = vsel %vm190_vm0, %v1185_v53, inf  ;;  %v1343_v46 = vsel %vm190_vm0, %v1286_v15, -inf }
 0x154   : > { %v1239_v36 = vmin.f32 %v3261_v27, %v3258_v25  ;;  %v1340_v56 = vmax.f32 %v3265_v51, %v3262_v43  ;;  %v1240_v26 = vsel %vm190_vm0, %v1184_v52, inf  ;;  %v1341_v21 = vsel %vm190_vm0, %v1285_v35, -inf  ;;  %922 = vadd.xlane.f32.xlu0 %v921_v61 }
 0x155   : > { %v1237_v58 = vmin.f32 %v3268_v30, %v1236_v34  ;;  %v1338_v18 = vmax.f32 %v3271_v55, %v1337_v57  ;;  %v1246_v7 = vsel %vm190_vm0, %v1187_v60, inf  ;;  %v1347_v13 = vsel %vm190_vm0, %v1288_v45, -inf }
 0x156   : > { %v1244_v6 = vsel %vm190_vm0, %v1186_v49, inf  ;;  %v1345_v38 = vsel %vm190_vm0, %v1287_v19, -inf  ;;  %v1243_v31 = vmin.f32 %v3272_v29, %v1242_v9  ;;  %v1344_v62 = vmax.f32 %v3273_v28, %v1343_v46 }
 0x157   : > { %v1241_v54 = vmin.f32 %v3274_v33, %v1240_v26  ;;  %v1342_v59 = vmax.f32 %v3275_v32, %v1341_v21  ;;  %v1247_v24 = vmin.f32 %v1239_v36, %v1246_v7  ;;  %v1348_v47 = vmax.f32 %v1340_v56, %v1347_v13 }
 0x158   : > { %v1245_v40 = vmin.f32 %v1237_v58, %v1244_v6  ;;  %v1346_v37 = vmax.f32 %v1338_v18, %v1345_v38  ;;  %vm1358_vm0 = vcmask 1040384   ;;  %vm1360_vm5 = vcmask 164864  }
 0x159   : > { %v1248_v12 = vmin.f32 %v1241_v54, %v1243_v31  ;;  %v1349_v16 = vmax.f32 %v1342_v59, %v1344_v62 }
 0x15a   : > { %v1249_v5 = vmin.f32 %v1245_v40, %v1247_v24  ;;  %v1350_v22 = vmax.f32 %v1346_v37, %v1348_v47 }
 0x15c   : > { %v1250_v3 = vmin.f32 %v1248_v12, %v1249_v5  ;;  %v1351_v41 = vmax.f32 %v1349_v16, %v1350_v22 }
 0x15e   : > { %v1251_v44 = vrot.slane %v1250_v3, 4  ;;  %v1352_v34 = vrot.slane %v1351_v41, 4 }
 0x160   : > { %v1252_v42 = vmin.f32 %v1250_v3, %v1251_v44  ;;  %v1353_v48 = vmax.f32 %v1351_v41, %v1352_v34 }
 0x162   : > { %v1253_v57 = vrot.slane %v1252_v42, 2  ;;  %v1354_v14 = vrot.slane %v1353_v48, 2 }
 0x164   : > { %v1254_v53 = vmin.f32 %v1252_v42, %v1253_v57  ;;  %v1355_v2 = vmax.f32 %v1353_v48, %v1354_v14 }
 0x166   : > { %v1255_v39 = vrot.slane %v1254_v53, 1  ;;  %v1356_v15 = vrot.slane %v1355_v2, 1 }
 0x168   : > { %v1256_v17 = vmin.f32 %v1254_v53, %v1255_v39  ;;  %v1357_v52 = vmax.f32 %v1355_v2, %v1356_v15 }
 0x16a   : > { %v1359_v35 = vsel %vm1358_vm0, %v1256_v17, %v1357_v52 }
 0x16b   : > { %1361 = vst.msk [vmem:[%s145_s30] sm:$0x3] %vm1360_vm5, %v1359_v35 }
 0x16c   : > { %1603 = shalt.err (!%p1600_p3)
}
 0x16d   : > { %s1604_s17 = scalar_lea.hbm %s3032_s6, 32  ;;  %s1608_s25 = scalar_lea.hbm %s3140_s2, 64 }
 0x16e   : > { %p1605_p4 = scmp.ne.s32.totalorder %s3032_s6, %s1604_s17  ;;  %p1609_p9 = scmp.lt.s32.totalorder %s3032_s6, %s3140_s2 }
 0x16f   : > { %p1610_p10 = scmp.lt.s32.totalorder %s1608_s25, %s1604_s17 }
 0x170   : > { %p1606_p7 = pnand %p1605_p4, %p1706_p5 }
 0x171   : > { %p1611_p11 = por %p1610_p10, %p1609_p9 }
 0x172   : > { %p1607_p8 = pneg %p1606_p7 }
 0x174   : > { %p1612_p12 = pnand %p1611_p11, %p1607_p8 }
 0x176   : > { %1615 = shalt.err (!%p1612_p12)
}
 0x177   : > { %1483 = dma.vmem_to_hbm [thread:$0]  (%p1706_p5), %s1386_s3, 32, %s3032_s6, %s1368_s7   ;;  %vm960_vm8 = vcmask 7168  }
 0x178   : > { %s3055_s30 = scalar_lea.vmem %s3139_s1, %s1475_s23 }
 0x18b   : > { %v836_v63 = vpop.xlane.xlu1 %835 }
 0x18c   : > { %v929_v60 = vmul.f32 0.04761905, %v836_v63 }
 0x18e   : > { %962 = vst.msk [vmem:[%s3055_s30 + $0x8] sm:$0xff] %vm960_vm8, %v929_v60 }
 0x18f   : > { %v833_v45 = vpop.xlane.xlu0 %832 }
 0x190   : > { %v928_v1 = vmul.f32 0.04761905, %v833_v45 }
 0x191   : > { %v842_v49 = vpop.xlane.xlu1 %841 }
 0x192   : > { %961 = vst.msk [vmem:[%s3055_s30] sm:$0xff] %vm960_vm8, %v928_v1  ;;  %v931_v19 = vmul.f32 0.04761905, %v842_v49 }
 0x194   : > { %964 = vst.msk [vmem:[%s3055_s30 + $0x18] sm:$0xff] %vm960_vm8, %v931_v19 }
 0x195   : > { %v839_v61 = vpop.xlane.xlu0 %838 }
 0x196   : > { %v930_v25 = vmul.f32 0.04761905, %v839_v61 }
 0x198   : > { %963 = vst.msk [vmem:[%s3055_s30 + $0x10] sm:$0xff] %vm960_vm8, %v930_v25  ;;  %v848_v11 = vpop.xlane.xlu1 %847 }
 0x199   : > { %v933_v50 = vmul.f32 0.04761905, %v848_v11  ;;  %v845_v27 = vpop.xlane.xlu0 %844 }
 0x19a   : > { %v932_v36 = vmul.f32 0.04761905, %v845_v27 }
 0x19b   : > { %966 = vst.msk [vmem:[%s3055_s30 + $0x28] sm:$0xff] %vm960_vm8, %v933_v50 }
 0x19c   : > { %965 = vst.msk [vmem:[%s3055_s30 + $0x20] sm:$0xff] %vm960_vm8, %v932_v36 }
 0x19e   : > { %v854_v43 = vpop.xlane.xlu1 %853 }
 0x19f   : > { %v935_v8 = vmul.f32 0.04761905, %v854_v43 }
 0x1a1   : > { %968 = vst.msk [vmem:[%s3055_s30 + $0x38] sm:$0xff] %vm960_vm8, %v935_v8 }
 0x1a2   : > { %v851_v4 = vpop.xlane.xlu0 %850 }
 0x1a3   : > { %v934_v51 = vmul.f32 0.04761905, %v851_v4 }
 0x1a5   : > { %967 = vst.msk [vmem:[%s3055_s30 + $0x30] sm:$0xff] %vm960_vm8, %v934_v51 }
 0x1a6   : > { %v860_v56 = vpop.xlane.xlu1 %859 }
 0x1a7   : > { %v937_v20 = vmul.f32 0.04761905, %v860_v56  ;;  %v857_v0 = vpop.xlane.xlu0 %856 }
 0x1a8   : > { %v936_v30 = vmul.f32 0.04761905, %v857_v0 }
 0x1a9   : > { %970 = vst.msk [vmem:[%s3055_s30 + $0x48] sm:$0xff] %vm960_vm8, %v937_v20 }
 0x1aa   : > { %969 = vst.msk [vmem:[%s3055_s30 + $0x40] sm:$0xff] %vm960_vm8, %v936_v30 }
 0x1ac   : > { %v866_v58 = vpop.xlane.xlu1 %865 }
 0x1ad   : > { %v939_v10 = vmul.f32 0.04761905, %v866_v58  ;;  %v863_v23 = vpop.xlane.xlu0 %862 }
 0x1ae   : > { %v938_v55 = vmul.f32 0.04761905, %v863_v23 }
 0x1af   : > { %972 = vst.msk [vmem:[%s3055_s30 + $0x58] sm:$0xff] %vm960_vm8, %v939_v10 }
 0x1b0   : > { %971 = vst.msk [vmem:[%s3055_s30 + $0x50] sm:$0xff] %vm960_vm8, %v938_v55 }
 0x1b2   : > { %v872_v18 = vpop.xlane.xlu1 %871 }
 0x1b3   : > { %v941_v9 = vmul.f32 0.04761905, %v872_v18  ;;  %v869_v46 = vpop.xlane.xlu0 %868 }
 0x1b4   : > { %v940_v26 = vmul.f32 0.04761905, %v869_v46 }
 0x1b5   : > { %974 = vst.msk [vmem:[%s3055_s30 + $0x68] sm:$0xff] %vm960_vm8, %v941_v9 }
 0x1b6   : > { %973 = vst.msk [vmem:[%s3055_s30 + $0x60] sm:$0xff] %vm960_vm8, %v940_v26 }
 0x1b7   : > { %v878_v21 = vpop.xlane.xlu1 %877 }
 0x1b8   : > { %v943_v7 = vmul.f32 0.04761905, %v878_v21 }
 0x1b9   : > { %v875_v13 = vpop.xlane.xlu0 %874 }
 0x1ba   : > { %v942_v6 = vmul.f32 0.04761905, %v875_v13  ;;  %976 = vst.msk [vmem:[%s3055_s30 + $0x78] sm:$0xff] %vm960_vm8, %v943_v7 }
 0x1bc   : > { %975 = vst.msk [vmem:[%s3055_s30 + $0x70] sm:$0xff] %vm960_vm8, %v942_v6 }
 0x1be   : > { %v884_v38 = vpop.xlane.xlu1 %883 }
 0x1bf   : > { %v945_v29 = vmul.f32 0.04761905, %v884_v38  ;;  %v881_v31 = vpop.xlane.xlu0 %880 }
 0x1c0   : > { %v944_v28 = vmul.f32 0.04761905, %v881_v31 }
 0x1c1   : > { %978 = vst.msk [vmem:[%s3055_s30 + $0x88] sm:$0xff] %vm960_vm8, %v945_v29 }
 0x1c2   : > { %977 = vst.msk [vmem:[%s3055_s30 + $0x80] sm:$0xff] %vm960_vm8, %v944_v28 }
 0x1c3   : > { %v890_v62 = vpop.xlane.xlu1 %889 }
 0x1c4   : > { %v947_v33 = vmul.f32 0.04761905, %v890_v62 }
 0x1c5   : > { %v887_v54 = vpop.xlane.xlu0 %886 }
 0x1c6   : > { %980 = vst.msk [vmem:[%s3055_s30 + $0x98] sm:$0xff] %vm960_vm8, %v947_v33  ;;  %v946_v32 = vmul.f32 0.04761905, %v887_v54 }
 0x1c7   : > { %v896_v59 = vpop.xlane.xlu1 %895 }
 0x1c8   : > { %979 = vst.msk [vmem:[%s3055_s30 + $0x90] sm:$0xff] %vm960_vm8, %v946_v32  ;;  %v949_v24 = vmul.f32 0.04761905, %v896_v59 }
 0x1c9   : > { %v893_v47 = vpop.xlane.xlu0 %892 }
 0x1ca   : > { %982 = vst.msk [vmem:[%s3055_s30 + $0xa8] sm:$0xff] %vm960_vm8, %v949_v24  ;;  %v948_v40 = vmul.f32 0.04761905, %v893_v47 }
 0x1cb   : > { %v902_v37 = vpop.xlane.xlu1 %901 }
 0x1cc   : > { %981 = vst.msk [vmem:[%s3055_s30 + $0xa0] sm:$0xff] %vm960_vm8, %v948_v40  ;;  %v951_v12 = vmul.f32 0.04761905, %v902_v37 }
 0x1cd   : > { %v899_v16 = vpop.xlane.xlu0 %898 }
 0x1ce   : > { %984 = vst.msk [vmem:[%s3055_s30 + $0xb8] sm:$0xff] %vm960_vm8, %v951_v12  ;;  %v950_v5 = vmul.f32 0.04761905, %v899_v16 }
 0x1cf   : > { %v908_v22 = vpop.xlane.xlu1 %907 }
 0x1d0   : > { %983 = vst.msk [vmem:[%s3055_s30 + $0xb0] sm:$0xff] %vm960_vm8, %v950_v5  ;;  %v953_v3 = vmul.f32 0.04761905, %v908_v22 }
 0x1d1   : > { %v905_v41 = vpop.xlane.xlu0 %904 }
 0x1d2   : > { %986 = vst.msk [vmem:[%s3055_s30 + $0xc8] sm:$0xff] %vm960_vm8, %v953_v3  ;;  %v952_v44 = vmul.f32 0.04761905, %v905_v41 }
 0x1d3   : > { %v914_v34 = vpop.xlane.xlu1 %913 }
 0x1d4   : > { %985 = vst.msk [vmem:[%s3055_s30 + $0xc0] sm:$0xff] %vm960_vm8, %v952_v44  ;;  %v955_v42 = vmul.f32 0.04761905, %v914_v34 }
 0x1d5   : > { %v911_v48 = vpop.xlane.xlu0 %910 }
 0x1d6   : > { %988 = vst.msk [vmem:[%s3055_s30 + $0xd8] sm:$0xff] %vm960_vm8, %v955_v42  ;;  %v954_v57 = vmul.f32 0.04761905, %v911_v48 }
 0x1d7   : > { %v920_v14 = vpop.xlane.xlu1 %919 }
 0x1d8   : > { %987 = vst.msk [vmem:[%s3055_s30 + $0xd0] sm:$0xff] %vm960_vm8, %v954_v57  ;;  %v957_v53 = vmul.f32 0.04761905, %v920_v14 }
 0x1d9   : > { %v917_v2 = vpop.xlane.xlu0 %916 }
 0x1da   : > { %990 = vst.msk [vmem:[%s3055_s30 + $0xe8] sm:$0xff] %vm960_vm8, %v957_v53  ;;  %v956_v39 = vmul.f32 0.04761905, %v917_v2 }
 0x1db   : > { %v926_v15 = vpop.xlane.xlu1 %925 }
 0x1dc   : > { %989 = vst.msk [vmem:[%s3055_s30 + $0xe0] sm:$0xff] %vm960_vm8, %v956_v39  ;;  %v959_v17 = vmul.f32 0.04761905, %v926_v15 }
 0x1dd   : > { %v923_v52 = vpop.xlane.xlu0 %922 }
 0x1de   : > { %992 = vst.msk [vmem:[%s3055_s30 + $0xf8] sm:$0xff] %vm960_vm8, %v959_v17  ;;  %v958_v35 = vmul.f32 0.04761905, %v923_v52 }
 0x1e0   : > { %991 = vst.msk [vmem:[%s3055_s30 + $0xf0] sm:$0xff] %vm960_vm8, %v958_v35 }
 0x1e1 PF: > { %p1489_p5 = scmp.ge.s32.totalorder %s1650_s12, 2  ;;  %s1405_s19 = sand.u32 1, %s1638_s9  }
 0x1e2   : > { %s1406_s22 = scalar_lea.sflag [#allocation3], %s1405_s19 }
 0x1e3   : > { %p1486_p13 = pnand %p1489_p5, %p1710_p6 }
 0x1e5   : > { %p1487_p0 = pneg %p1486_p13 }
 0x1e7   : > { %1633 = dma.done.wait (%p1487_p0), %s1406_s22, 32  }
 0x1e8   : > { %1635 = vsyncadd (%p1487_p0), %s1406_s22, 4294967264  ;;  %p13_p1 = scmp.ge.s32.totalorder %s1693_s15, 4   ;;  %s3276_s9 = smov %s1642_s10 }
 0x1e9   : > { %s3277_s10 = smov %s1646_s11  ;;  %s3278_s11 = smov %s1704_s18 }
 0x1ea   : > { %s3279_s12 = smov %s1693_s15  ;;  %15 = sbr.rel (!%p13_p1) target bundleno = 3 (0x3), region = 71 }
 0x1ef   :  { %1411 = vsyncpa [#allocation3], 1 }
 0x1f0   :  { %1413 = vsyncpa [#allocation3 + $0x1], 1 }

</bundles_post_ra>
